<compile_context>
chip_gen: v7x
topology: tpu7x:2x2x1
jax: 0.10.0
libtpu: 0.0.40
codegen_flags: <defaults>
</compile_context>

<pallas_src>
import jax
import jax.numpy as jnp
from jax.experimental import pallas as pl
from jax.experimental.pallas import tpu as pltpu


# -----------------------------------------------------------------------------
# Pallas kernels
# -----------------------------------------------------------------------------
def _conv_bias_relu_ln_kernel(p_ref, w_ref, b_ref, g_ref, beta_ref, o_ref):
    # p_ref:    (1, Cin*9, H*W)  im2col patches for one batch element
    # w_ref:    (Cout, Cin*9)    flattened conv weight
    # b_ref:    (Cout, 1)        conv bias (column vector -> broadcasts over lanes)
    # g_ref:    (1, H*W)         LayerNorm gamma (flattened [H, W])
    # beta_ref: (1, H*W)         LayerNorm beta
    # o_ref:    (1, Cout, H*W)
    y = jnp.dot(w_ref[...], p_ref[0], preferred_element_type=jnp.float32)
    y = y + b_ref[...]                                   # conv bias
    y = jnp.maximum(y, 0.0)                              # ReLU
    mu = jnp.mean(y, axis=-1, keepdims=True)             # LN over H*W per channel
    yc = y - mu
    var = jnp.mean(yc * yc, axis=-1, keepdims=True)      # biased variance (PyTorch LN)
    inv = jax.lax.rsqrt(var + 1e-5)
    o_ref[0] = (yc * inv * g_ref[...] + beta_ref[...]).astype(o_ref.dtype)


def conv_bias_relu_ln(patches, w_flat, bias_col, gamma_row, beta_row):
    """patches: [B, Cin*9, HW] -> [B, Cout, HW], fused conv + bias + ReLU + LN."""
    B, K, HW = patches.shape
    Cout = w_flat.shape[0]
    return pl.pallas_call(
        _conv_bias_relu_ln_kernel,
        out_shape=jax.ShapeDtypeStruct((B, Cout, HW), jnp.float32),
        grid=(B,),
        in_specs=[
            pl.BlockSpec((1, K, HW), lambda b: (b, 0, 0)),
            pl.BlockSpec((Cout, K), lambda b: (0, 0)),
            pl.BlockSpec((Cout, 1), lambda b: (0, 0)),
            pl.BlockSpec((1, HW), lambda b: (0, 0)),
            pl.BlockSpec((1, HW), lambda b: (0, 0)),
        ],
        out_specs=pl.BlockSpec((1, Cout, HW), lambda b: (b, 0, 0)),
        compiler_params=pltpu.CompilerParams(
            dimension_semantics=("parallel",)),   # batch axis -> v7x megacore
    )(patches, w_flat, bias_col, gamma_row, beta_row)


def _matmul_bias_kernel(x_ref, w_ref, b_ref, o_ref):
    acc = jnp.dot(x_ref[...], w_ref[...], preferred_element_type=jnp.float32)
    o_ref[...] = (acc + b_ref[...]).astype(o_ref.dtype)


def matmul_bias(x, w, b):
    """x: [M, K], w: [K, N], b: [1, N] -> [M, N]  (final FC layer)."""
    M, K = x.shape
    N = w.shape[1]
    return pl.pallas_call(
        _matmul_bias_kernel,
        out_shape=jax.ShapeDtypeStruct((M, N), jnp.float32),
        grid=(1,),
        in_specs=[
            pl.BlockSpec((M, K), lambda i: (0, 0)),
            pl.BlockSpec((K, N), lambda i: (0, 0)),
            pl.BlockSpec((1, N), lambda i: (0, 0)),
        ],
        out_specs=pl.BlockSpec((M, N), lambda i: (0, 0)),
    )(x, w, b)


# -----------------------------------------------------------------------------
# JAX glue (tiny reshapes / slices between kernels)
# -----------------------------------------------------------------------------
def im2col3x3(x):
    """x: [B, C, H, W] -> [B, C*9, H*W]  (row index = ci*9 + kh*3 + kw)."""
    B, C, H, W = x.shape
    xp = jnp.pad(x, ((0, 0), (0, 0), (1, 1), (1, 1)))
    cols = [xp[:, :, dh:dh + H, dw:dw + W] for dh in range(3) for dw in range(3)]
    p = jnp.stack(cols, axis=2)            # [B, C, 9, H, W]
    return p.reshape(B, C * 9, H * W)


def maxpool2x2(x):
    """nn.MaxPool2d(2, 2) with floor on odd dims; x: [B, C, H, W]."""
    B, C, H, W = x.shape
    Hc, Wc = (H // 2) * 2, (W // 2) * 2
    x = x[:, :, :Hc, :Wc]
    return x.reshape(B, C, Hc // 2, 2, Wc // 2, 2).max(axis=(3, 5))


# -----------------------------------------------------------------------------
# SimpleCNN0 forward: [B, 1, 12, 100] -> [B, 39]
# -----------------------------------------------------------------------------
def simple_cnn0_forward(x, p):
    B = x.shape[0]
    # conv1 + ReLU + LayerNorm([12, 100])  (one fused Pallas kernel)
    y = conv_bias_relu_ln(im2col3x3(x), p["conv1_w"], p["conv1_b"],
                          p["ln1_w"], p["ln1_b"])          # [B, 16, 1200]
    y = maxpool2x2(y.reshape(B, 16, 12, 100))              # [B, 16, 6, 50]
    # conv2 + ReLU + LayerNorm([6, 50])    (one fused Pallas kernel)
    y = conv_bias_relu_ln(im2col3x3(y), p["conv2_w"], p["conv2_b"],
                          p["ln2_w"], p["ln2_b"])          # [B, 32, 300]
    y = maxpool2x2(y.reshape(B, 32, 6, 50))                # [B, 32, 3, 25]
    # dropout == identity (inference)
    y = y.reshape(B, -1)                                    # [B, 2400] (NCHW flatten == torch .view)
    return matmul_bias(y, p["fc_w"], p["fc_b"])             # [B, 39]


# -----------------------------------------------------------------------------
# Deterministic parameter construction (replaces trained weights)
# -----------------------------------------------------------------------------
def init_params(key):
    k = jax.random.split(key, 6)

    def u(kk, shape, bound):
        return jax.random.uniform(kk, shape, jnp.float32, -bound, bound)

    b1 = 1.0 / (1 * 9) ** 0.5      # fan_in conv1
    b2 = 1.0 / (16 * 9) ** 0.5     # fan_in conv2
    bf = 1.0 / 2400.0 ** 0.5       # fan_in fc
    return {
        # conv weights pre-flattened to [Cout, Cin*9]; biases as column vectors;
        # LN affine params pre-flattened to [1, H*W]; fc weight pre-transposed.
        "conv1_w": u(k[0], (16, 1, 3, 3), b1).reshape(16, 9),
        "conv1_b": u(k[1], (16,), b1).reshape(16, 1),
        "ln1_w": jnp.ones((1, 12 * 100), jnp.float32),
        "ln1_b": jnp.zeros((1, 12 * 100), jnp.float32),
        "conv2_w": u(k[2], (32, 16, 3, 3), b2).reshape(32, 16 * 9),
        "conv2_b": u(k[3], (32,), b2).reshape(32, 1),
        "ln2_w": jnp.ones((1, 6 * 50), jnp.float32),
        "ln2_b": jnp.zeros((1, 6 * 50), jnp.float32),
        "fc_w": u(k[4], (2400, 39), bf),
        "fc_b": u(k[5], (39,), bf).reshape(1, 39),
    }


if __name__ == "__main__":
    key = jax.random.PRNGKey(0)
    k_x, k_p = jax.random.split(key)

    B = 2
    x = jax.random.normal(k_x, (B, 1, 12, 100), dtype=jnp.float32)
    params = init_params(k_p)

    fwd = jax.jit(lambda xx: simple_cnn0_forward(xx, params))
    out = fwd(x)
    jax.block_until_ready(out)
    assert out.shape == (B, 39) and out.dtype == jnp.float32
    assert bool(jnp.all(jnp.isfinite(out)))
    print("KERNEL_OK")
</pallas_src>

<mosaic_0001>
module attributes {stable_mosaic.version = 11 : i64} {
  func.func @_conv_bias_relu_ln_kernel(%arg0: i32, %arg1: memref<1x9x1200xf32, #tpu.memory_space<vmem>>, %arg2: memref<16x9xf32, #tpu.memory_space<vmem>>, %arg3: memref<16x1xf32, #tpu.memory_space<vmem>>, %arg4: memref<1x1200xf32, #tpu.memory_space<vmem>>, %arg5: memref<1x1200xf32, #tpu.memory_space<vmem>>, %arg6: memref<1x16x1200xf32, #tpu.memory_space<vmem>>) attributes {dimension_semantics = [#tpu.dimension_semantics<parallel>], iteration_bounds = array<i64: 2>, scalar_prefetch = 0 : i64, scratch_operands = 0 : i64, tpu.core_type = #tpu.core_type<tc>, window_params = [{transform_indices = @transform_0, window_bounds = array<i64: 1, 9, 1200>}, {pipeline_mode = #tpu.pipeline_mode<synchronous>, transform_indices = @transform_1, window_bounds = array<i64: 16, 9>}, {pipeline_mode = #tpu.pipeline_mode<synchronous>, transform_indices = @transform_2, window_bounds = array<i64: 16, 1>}, {pipeline_mode = #tpu.pipeline_mode<synchronous>, transform_indices = @transform_3, window_bounds = array<i64: 1, 1200>}, {pipeline_mode = #tpu.pipeline_mode<synchronous>, transform_indices = @transform_4, window_bounds = array<i64: 1, 1200>}, {transform_indices = @transform_5, window_bounds = array<i64: 1, 16, 1200>}]} {
    %c0 = arith.constant 0 : index
    %c0_0 = arith.constant 0 : index
    %0 = vector.load %arg2[%c0, %c0_0] : memref<16x9xf32, #tpu.memory_space<vmem>>, vector<16x9xf32>
    %c0_1 = arith.constant 0 : index
    %c0_2 = arith.constant 0 : index
    %c0_3 = arith.constant 0 : index
    %1 = vector.load %arg1[%c0_1, %c0_2, %c0_3] : memref<1x9x1200xf32, #tpu.memory_space<vmem>>, vector<1x9x1200xf32>
    %2 = vector.shape_cast %1 : vector<1x9x1200xf32> to vector<9x1200xf32>
    %cst = arith.constant dense<0.000000e+00> : vector<16x1200xf32>
    %3 = tpu.matmul %0, %2, %cst {dimension_numbers = #tpu.dot_dimension_numbers<[1], [0], [0], [1], [0, 0, 1, 1], [], []>} : vector<16x9xf32>, vector<9x1200xf32>, vector<16x1200xf32> -> vector<16x1200xf32>
    %c0_4 = arith.constant 0 : index
    %c0_5 = arith.constant 0 : index
    %4 = vector.load %arg3[%c0_4, %c0_5] : memref<16x1xf32, #tpu.memory_space<vmem>>, vector<16x1xf32>
    %5 = vector.broadcast %4 : vector<16x1xf32> to vector<16x1200xf32>
    %6 = arith.addf %3, %5 : vector<16x1200xf32>
    %cst_6 = arith.constant 0.000000e+00 : f32
    %7 = vector.broadcast %cst_6 : f32 to vector<16x1200xf32>
    %8 = arith.maximumf %6, %7 : vector<16x1200xf32>
    %cst_7 = arith.constant dense<0.000000e+00> : vector<16xf32>
    %9 = vector.multi_reduction <add>, %8, %cst_7 [1] : vector<16x1200xf32> to vector<16xf32>
    %10 = vector.shape_cast %9 : vector<16xf32> to vector<16x1xf32>
    %cst_8 = arith.constant 1.200000e+03 : f32
    %11 = vector.broadcast %cst_8 : f32 to vector<16x1xf32>
    %12 = arith.divf %10, %11 : vector<16x1xf32>
    %13 = vector.broadcast %12 : vector<16x1xf32> to vector<16x1200xf32>
    %14 = arith.subf %8, %13 : vector<16x1200xf32>
    %15 = arith.mulf %14, %14 : vector<16x1200xf32>
    %cst_9 = arith.constant dense<0.000000e+00> : vector<16xf32>
    %16 = vector.multi_reduction <add>, %15, %cst_9 [1] : vector<16x1200xf32> to vector<16xf32>
    %17 = vector.shape_cast %16 : vector<16xf32> to vector<16x1xf32>
    %cst_10 = arith.constant 1.200000e+03 : f32
    %18 = vector.broadcast %cst_10 : f32 to vector<16x1xf32>
    %19 = arith.divf %17, %18 : vector<16x1xf32>
    %cst_11 = arith.constant 9.99999974E-6 : f32
    %20 = vector.broadcast %cst_11 : f32 to vector<16x1xf32>
    %21 = arith.addf %19, %20 : vector<16x1xf32>
    %22 = math.rsqrt %21 : vector<16x1xf32>
    %23 = vector.broadcast %22 : vector<16x1xf32> to vector<16x1200xf32>
    %24 = arith.mulf %14, %23 : vector<16x1200xf32>
    %c0_12 = arith.constant 0 : index
    %c0_13 = arith.constant 0 : index
    %25 = vector.load %arg4[%c0_12, %c0_13] : memref<1x1200xf32, #tpu.memory_space<vmem>>, vector<1x1200xf32>
    %26 = vector.broadcast %25 : vector<1x1200xf32> to vector<16x1200xf32>
    %27 = arith.mulf %24, %26 : vector<16x1200xf32>
    %c0_14 = arith.constant 0 : index
    %c0_15 = arith.constant 0 : index
    %28 = vector.load %arg5[%c0_14, %c0_15] : memref<1x1200xf32, #tpu.memory_space<vmem>>, vector<1x1200xf32>
    %29 = vector.broadcast %28 : vector<1x1200xf32> to vector<16x1200xf32>
    %30 = arith.addf %27, %29 : vector<16x1200xf32>
    %c0_16 = arith.constant 0 : index
    %c0_17 = arith.constant 0 : index
    %c0_18 = arith.constant 0 : index
    %31 = vector.load %arg6[%c0_16, %c0_17, %c0_18] : memref<1x16x1200xf32, #tpu.memory_space<vmem>>, vector<1x16x1200xf32>
    %32 = vector.shape_cast %31 : vector<1x16x1200xf32> to vector<16x1200xf32>
    %33 = vector.shape_cast %30 : vector<16x1200xf32> to vector<1x16x1200xf32>
    tpu.vector_store %arg6[%c0_16, %c0_17, %c0_18], %33 {strides = array<i32>} : memref<1x16x1200xf32, #tpu.memory_space<vmem>>, vector<1x16x1200xf32>,
    return
  }
  func.func @transform_0(%arg0: i32) -> (i32, i32, i32) {
    %c0_i32 = arith.constant 0 : i32
    %c0_i32_0 = arith.constant 0 : i32
    %c0_i32_1 = arith.constant 0 : i32
    return %arg0, %c0_i32, %c0_i32_0 : i32, i32, i32
  }
  func.func @transform_1(%arg0: i32) -> (i32, i32) {
    %c0_i32 = arith.constant 0 : i32
    %c0_i32_0 = arith.constant 0 : i32
    %c0_i32_1 = arith.constant 0 : i32
    return %c0_i32, %c0_i32_0 : i32, i32
  }
  func.func @transform_2(%arg0: i32) -> (i32, i32) {
    %c0_i32 = arith.constant 0 : i32
    %c0_i32_0 = arith.constant 0 : i32
    %c0_i32_1 = arith.constant 0 : i32
    return %c0_i32, %c0_i32_0 : i32, i32
  }
  func.func @transform_3(%arg0: i32) -> (i32, i32) {
    %c0_i32 = arith.constant 0 : i32
    %c0_i32_0 = arith.constant 0 : i32
    %c0_i32_1 = arith.constant 0 : i32
    return %c0_i32, %c0_i32_0 : i32, i32
  }
  func.func @transform_4(%arg0: i32) -> (i32, i32) {
    %c0_i32 = arith.constant 0 : i32
    %c0_i32_0 = arith.constant 0 : i32
    %c0_i32_1 = arith.constant 0 : i32
    return %c0_i32, %c0_i32_0 : i32, i32
  }
  func.func @transform_5(%arg0: i32) -> (i32, i32, i32) {
    %c0_i32 = arith.constant 0 : i32
    %c0_i32_0 = arith.constant 0 : i32
    %c0_i32_1 = arith.constant 0 : i32
    return %arg0, %c0_i32, %c0_i32_0 : i32, i32, i32
  }
}

module attributes {stable_mosaic.version = 11 : i64} {
  func.func @_conv_bias_relu_ln_kernel(%arg0: i32, %arg1: memref<1x144x300xf32, #tpu.memory_space<vmem>>, %arg2: memref<32x144xf32, #tpu.memory_space<vmem>>, %arg3: memref<32x1xf32, #tpu.memory_space<vmem>>, %arg4: memref<1x300xf32, #tpu.memory_space<vmem>>, %arg5: memref<1x300xf32, #tpu.memory_space<vmem>>, %arg6: memref<1x32x300xf32, #tpu.memory_space<vmem>>) attributes {dimension_semantics = [#tpu.dimension_semantics<parallel>], iteration_bounds = array<i64: 2>, scalar_prefetch = 0 : i64, scratch_operands = 0 : i64, tpu.core_type = #tpu.core_type<tc>, window_params = [{transform_indices = @transform_0, window_bounds = array<i64: 1, 144, 300>}, {pipeline_mode = #tpu.pipeline_mode<synchronous>, transform_indices = @transform_1, window_bounds = array<i64: 32, 144>}, {pipeline_mode = #tpu.pipeline_mode<synchronous>, transform_indices = @transform_2, window_bounds = array<i64: 32, 1>}, {pipeline_mode = #tpu.pipeline_mode<synchronous>, transform_indices = @transform_3, window_bounds = array<i64: 1, 300>}, {pipeline_mode = #tpu.pipeline_mode<synchronous>, transform_indices = @transform_4, window_bounds = array<i64: 1, 300>}, {transform_indices = @transform_5, window_bounds = array<i64: 1, 32, 300>}]} {
    %c0 = arith.constant 0 : index
    %c0_0 = arith.constant 0 : index
    %0 = vector.load %arg2[%c0, %c0_0] : memref<32x144xf32, #tpu.memory_space<vmem>>, vector<32x144xf32>
    %c0_1 = arith.constant 0 : index
    %c0_2 = arith.constant 0 : index
    %c0_3 = arith.constant 0 : index
    %1 = vector.load %arg1[%c0_1, %c0_2, %c0_3] : memref<1x144x300xf32, #tpu.memory_space<vmem>>, vector<1x144x300xf32>
    %2 = vector.shape_cast %1 : vector<1x144x300xf32> to vector<144x300xf32>
    %cst = arith.constant dense<0.000000e+00> : vector<32x300xf32>
    %3 = tpu.matmul %0, %2, %cst {dimension_numbers = #tpu.dot_dimension_numbers<[1], [0], [0], [1], [0, 0, 1, 1], [], []>} : vector<32x144xf32>, vector<144x300xf32>, vector<32x300xf32> -> vector<32x300xf32>
    %c0_4 = arith.constant 0 : index
    %c0_5 = arith.constant 0 : index
    %4 = vector.load %arg3[%c0_4, %c0_5] : memref<32x1xf32, #tpu.memory_space<vmem>>, vector<32x1xf32>
    %5 = vector.broadcast %4 : vector<32x1xf32> to vector<32x300xf32>
    %6 = arith.addf %3, %5 : vector<32x300xf32>
    %cst_6 = arith.constant 0.000000e+00 : f32
    %7 = vector.broadcast %cst_6 : f32 to vector<32x300xf32>
    %8 = arith.maximumf %6, %7 : vector<32x300xf32>
    %cst_7 = arith.constant dense<0.000000e+00> : vector<32xf32>
    %9 = vector.multi_reduction <add>, %8, %cst_7 [1] : vector<32x300xf32> to vector<32xf32>
    %10 = vector.shape_cast %9 : vector<32xf32> to vector<32x1xf32>
    %cst_8 = arith.constant 3.000000e+02 : f32
    %11 = vector.broadcast %cst_8 : f32 to vector<32x1xf32>
    %12 = arith.divf %10, %11 : vector<32x1xf32>
    %13 = vector.broadcast %12 : vector<32x1xf32> to vector<32x300xf32>
    %14 = arith.subf %8, %13 : vector<32x300xf32>
    %15 = arith.mulf %14, %14 : vector<32x300xf32>
    %cst_9 = arith.constant dense<0.000000e+00> : vector<32xf32>
    %16 = vector.multi_reduction <add>, %15, %cst_9 [1] : vector<32x300xf32> to vector<32xf32>
    %17 = vector.shape_cast %16 : vector<32xf32> to vector<32x1xf32>
    %cst_10 = arith.constant 3.000000e+02 : f32
    %18 = vector.broadcast %cst_10 : f32 to vector<32x1xf32>
    %19 = arith.divf %17, %18 : vector<32x1xf32>
    %cst_11 = arith.constant 9.99999974E-6 : f32
    %20 = vector.broadcast %cst_11 : f32 to vector<32x1xf32>
    %21 = arith.addf %19, %20 : vector<32x1xf32>
    %22 = math.rsqrt %21 : vector<32x1xf32>
    %23 = vector.broadcast %22 : vector<32x1xf32> to vector<32x300xf32>
    %24 = arith.mulf %14, %23 : vector<32x300xf32>
    %c0_12 = arith.constant 0 : index
    %c0_13 = arith.constant 0 : index
    %25 = vector.load %arg4[%c0_12, %c0_13] : memref<1x300xf32, #tpu.memory_space<vmem>>, vector<1x300xf32>
    %26 = vector.broadcast %25 : vector<1x300xf32> to vector<32x300xf32>
    %27 = arith.mulf %24, %26 : vector<32x300xf32>
    %c0_14 = arith.constant 0 : index
    %c0_15 = arith.constant 0 : index
    %28 = vector.load %arg5[%c0_14, %c0_15] : memref<1x300xf32, #tpu.memory_space<vmem>>, vector<1x300xf32>
    %29 = vector.broadcast %28 : vector<1x300xf32> to vector<32x300xf32>
    %30 = arith.addf %27, %29 : vector<32x300xf32>
    %c0_16 = arith.constant 0 : index
    %c0_17 = arith.constant 0 : index
    %c0_18 = arith.constant 0 : index
    %31 = vector.load %arg6[%c0_16, %c0_17, %c0_18] : memref<1x32x300xf32, #tpu.memory_space<vmem>>, vector<1x32x300xf32>
    %32 = vector.shape_cast %31 : vector<1x32x300xf32> to vector<32x300xf32>
    %33 = vector.shape_cast %30 : vector<32x300xf32> to vector<1x32x300xf32>
    tpu.vector_store %arg6[%c0_16, %c0_17, %c0_18], %33 {strides = array<i32>} : memref<1x32x300xf32, #tpu.memory_space<vmem>>, vector<1x32x300xf32>,
    return
  }
  func.func @transform_0(%arg0: i32) -> (i32, i32, i32) {
    %c0_i32 = arith.constant 0 : i32
    %c0_i32_0 = arith.constant 0 : i32
    %c0_i32_1 = arith.constant 0 : i32
    return %arg0, %c0_i32, %c0_i32_0 : i32, i32, i32
  }
  func.func @transform_1(%arg0: i32) -> (i32, i32) {
    %c0_i32 = arith.constant 0 : i32
    %c0_i32_0 = arith.constant 0 : i32
    %c0_i32_1 = arith.constant 0 : i32
    return %c0_i32, %c0_i32_0 : i32, i32
  }
  func.func @transform_2(%arg0: i32) -> (i32, i32) {
    %c0_i32 = arith.constant 0 : i32
    %c0_i32_0 = arith.constant 0 : i32
    %c0_i32_1 = arith.constant 0 : i32
    return %c0_i32, %c0_i32_0 : i32, i32
  }
  func.func @transform_3(%arg0: i32) -> (i32, i32) {
    %c0_i32 = arith.constant 0 : i32
    %c0_i32_0 = arith.constant 0 : i32
    %c0_i32_1 = arith.constant 0 : i32
    return %c0_i32, %c0_i32_0 : i32, i32
  }
  func.func @transform_4(%arg0: i32) -> (i32, i32) {
    %c0_i32 = arith.constant 0 : i32
    %c0_i32_0 = arith.constant 0 : i32
    %c0_i32_1 = arith.constant 0 : i32
    return %c0_i32, %c0_i32_0 : i32, i32
  }
  func.func @transform_5(%arg0: i32) -> (i32, i32, i32) {
    %c0_i32 = arith.constant 0 : i32
    %c0_i32_0 = arith.constant 0 : i32
    %c0_i32_1 = arith.constant 0 : i32
    return %arg0, %c0_i32, %c0_i32_0 : i32, i32, i32
  }
}

module attributes {stable_mosaic.version = 11 : i64} {
  func.func @_matmul_bias_kernel(%arg0: i32, %arg1: memref<2x2400xf32, #tpu.memory_space<vmem>>, %arg2: memref<2400x39xf32, #tpu.memory_space<vmem>>, %arg3: memref<1x39xf32, #tpu.memory_space<vmem>>, %arg4: memref<2x39xf32, #tpu.memory_space<vmem>>) attributes {dimension_semantics = [#tpu.dimension_semantics<arbitrary>], iteration_bounds = array<i64: 1>, scalar_prefetch = 0 : i64, scratch_operands = 0 : i64, tpu.core_type = #tpu.core_type<tc>, window_params = [{pipeline_mode = #tpu.pipeline_mode<synchronous>, transform_indices = @transform_0, window_bounds = array<i64: 2, 2400>}, {pipeline_mode = #tpu.pipeline_mode<synchronous>, transform_indices = @transform_1, window_bounds = array<i64: 2400, 39>}, {pipeline_mode = #tpu.pipeline_mode<synchronous>, transform_indices = @transform_2, window_bounds = array<i64: 1, 39>}, {pipeline_mode = #tpu.pipeline_mode<synchronous>, transform_indices = @transform_3, window_bounds = array<i64: 2, 39>}]} {
    %c0 = arith.constant 0 : index
    %c0_0 = arith.constant 0 : index
    %0 = vector.load %arg1[%c0, %c0_0] : memref<2x2400xf32, #tpu.memory_space<vmem>>, vector<2x2400xf32>
    %c0_1 = arith.constant 0 : index
    %c0_2 = arith.constant 0 : index
    %1 = vector.load %arg2[%c0_1, %c0_2] : memref<2400x39xf32, #tpu.memory_space<vmem>>, vector<2400x39xf32>
    %cst = arith.constant dense<0.000000e+00> : vector<2x39xf32>
    %2 = tpu.matmul %0, %1, %cst {dimension_numbers = #tpu.dot_dimension_numbers<[1], [0], [0], [1], [0, 0, 1, 1], [], []>} : vector<2x2400xf32>, vector<2400x39xf32>, vector<2x39xf32> -> vector<2x39xf32>
    %c0_3 = arith.constant 0 : index
    %c0_4 = arith.constant 0 : index
    %3 = vector.load %arg3[%c0_3, %c0_4] : memref<1x39xf32, #tpu.memory_space<vmem>>, vector<1x39xf32>
    %4 = vector.broadcast %3 : vector<1x39xf32> to vector<2x39xf32>
    %5 = arith.addf %2, %4 : vector<2x39xf32>
    %c0_5 = arith.constant 0 : index
    %c0_6 = arith.constant 0 : index
    %6 = vector.load %arg4[%c0_5, %c0_6] : memref<2x39xf32, #tpu.memory_space<vmem>>, vector<2x39xf32>
    tpu.vector_store %arg4[%c0_5, %c0_6], %5 {strides = array<i32>} : memref<2x39xf32, #tpu.memory_space<vmem>>, vector<2x39xf32>,
    return
  }
  func.func @transform_0(%arg0: i32) -> (i32, i32) {
    %c0_i32 = arith.constant 0 : i32
    %c0_i32_0 = arith.constant 0 : i32
    %c0_i32_1 = arith.constant 0 : i32
    return %c0_i32, %c0_i32_0 : i32, i32
  }
  func.func @transform_1(%arg0: i32) -> (i32, i32) {
    %c0_i32 = arith.constant 0 : i32
    %c0_i32_0 = arith.constant 0 : i32
    %c0_i32_1 = arith.constant 0 : i32
    return %c0_i32, %c0_i32_0 : i32, i32
  }
  func.func @transform_2(%arg0: i32) -> (i32, i32) {
    %c0_i32 = arith.constant 0 : i32
    %c0_i32_0 = arith.constant 0 : i32
    %c0_i32_1 = arith.constant 0 : i32
    return %c0_i32, %c0_i32_0 : i32, i32
  }
  func.func @transform_3(%arg0: i32) -> (i32, i32) {
    %c0_i32 = arith.constant 0 : i32
    %c0_i32_0 = arith.constant 0 : i32
    %c0_i32_1 = arith.constant 0 : i32
    return %c0_i32, %c0_i32_0 : i32, i32
  }
}

</mosaic_0001>

<bundles_post_ra>
// kernel: _lambda_.3
= control target key start
LH: loop header
LB: loop body
LE: loop exit
PB: predicated region body
PF: predicated region fallthrough
CT: control target
= control target key end

     0   :  { %10 = vsyncpa [#allocation3], 0  ;;  %s1804_s0 = inlined_call_operand.vmem [shape: f32[2,9,1200], index: 0, kind: input, shape index: {}]   ;;  %s1805_s1 = inlined_call_operand.hbm [shape: f32[16,9], index: 1, kind: input, shape index: {}]   ;;  %s1806_s2 = inlined_call_operand.hbm [shape: f32[16,1], index: 2, kind: input, shape index: {}]   ;;  %s1807_s3 = inlined_call_operand.vmem [shape: f32[1,1200], index: 3, kind: input, shape index: {}]   ;;  %s1808_s4 = inlined_call_operand.vmem [shape: f32[1,1200], index: 4, kind: input, shape index: {}]   ;;  %s1809_s5 = inlined_call_operand.vmem [shape: f32[2,16,1200], index: 5, kind: output, shape index: {}]  }
   0x1   :  { %11 = vsyncpa [#allocation5], 0  ;;  %s1309_s18 = smov 0  }
   0x2 LB: > { %s1315_s19 = sadd.s32 4294967295, %s1270_s18   ;;  %p1097_p0 = scmp.ge.s32.totalorder %s1270_s18, 1  ;;  %s1270_s18 = sphi %s1309_s18, %s17_s18  }
   0x3   : > { %p158_p1 = scmp.lt.s32.totalorder %s1270_s18, 3  ;;  %s1272_s20 = smov [#allocation2]  }
   0x4   : > { %s170_s21 = sshll.u32 %s1272_s20, 4  ;;  %p1810_p3 = scmp.eq.s32.totalorder %s1315_s19, 0  ;;  %s171_s21 = int_to_ptr.vmem [resolvable:$true] %s170_s21 }
   0x5   : > { %p1319_p2 = pnand %p1097_p0, %p158_p1  ;;  %s1273_s23 = smov [#allocation4]  }
   0x6   : > { %s183_s24 = sshll.u32 %s1273_s23, 4  ;;  %s1200_s28 = scalar_lea.hbm %s1805_s1, 256  ;;  %s1332_s24 = int_to_ptr.vmem [resolvable:$true] %s183_s24 }
   0x7   : > { %s1812_s22 = scalar_select %p1319_p2, 1, 0 }
   0x8   : > { %p1169_p4 = pneg %p1319_p2  ;;  %p1201_p6 = scmp.ne.s32.totalorder %s1805_s1, %s1200_s28 }
   0x9   : > { %p1207_p10 = scmp.lt.u32.totalorder %s1200_s28, %s1805_s1 }
   0xa   : > { %p1328_p5 = pnand %p1810_p3, %p1169_p4 }
   0xc   : > { %p1202_p7 = pneg %p1328_p5 }
   0xe   : > { %p1203_p8 = pnand %p1202_p7, %p1201_p6 }
  0x10   : > { %p1204_p9 = pneg %p1203_p8 }
  0x12   : > { %p1209_p11 = pnand %p1207_p10, %p1204_p9 }
  0x14   : > { %1212 = shalt.err (!%p1209_p11)
}
  0x15   : > { %s1213_s8 = scalar_lea.vmem %s171_s21, 256  ;;  %p1221_p1 = scmp.lt.s32.totalorder %s171_s21, %s171_s21 }
  0x16   : > { %p1214_p12 = scmp.ne.s32.totalorder %s171_s21, %s1213_s8  ;;  %p1222_p4 = scmp.lt.s32.totalorder %s1213_s8, %s1213_s8 }
  0x18   : > { %p1216_p13 = pnand %p1214_p12, %p1202_p7  ;;  %p1223_p3 = por %p1222_p4, %p1221_p1 }
  0x1a   : > { %p1217_p0 = pneg %p1216_p13 }
  0x1c   : > { %p1224_p2 = pnand %p1223_p3, %p1217_p0 }
  0x1e   : > { %1227 = shalt.err (!%p1224_p2)
}
  0x1f   : > { %s1274_s9 = smov 128   ;;  %s1275_s10 = smov 8  }
  0x20   : > { %1172 = dma.hbm_to_vmem [thread:$0]  (!%p1328_p5), %s1805_s1, 256, %s171_s21, [#allocation3], %s1274_s9, %s1274_s9, %s1275_s10  }
  0x21   : > { %s1228_s15 = scalar_lea.hbm %s1806_s2, 256 }
  0x22   : > { %p1229_p6 = scmp.ne.s32.totalorder %s1806_s2, %s1228_s15  ;;  %p1235_p8 = scmp.lt.u32.totalorder %s1228_s15, %s1806_s2 }
  0x24   : > { %p1231_p2 = pnand %p1229_p6, %p1202_p7 }
  0x26   : > { %p1232_p3 = pneg %p1231_p2 }
  0x28   : > { %p1237_p9 = pnand %p1235_p8, %p1232_p3 }
  0x2a   : > { %1240 = shalt.err (!%p1237_p9)
}
  0x2b   : > { %s1241_s21 = scalar_lea.vmem %s1332_s24, 256  ;;  %p1249_p13 = scmp.lt.s32.totalorder %s1332_s24, %s1332_s24 }
  0x2c   : > { %p1242_p10 = scmp.ne.s32.totalorder %s1332_s24, %s1241_s21  ;;  %p1250_p0 = scmp.lt.s32.totalorder %s1241_s21, %s1241_s21 }
  0x2e   : > { %p1244_p11 = pnand %p1242_p10, %p1202_p7  ;;  %p1251_p1 = por %p1250_p0, %p1249_p13 }
  0x30   : > { %p1245_p12 = pneg %p1244_p11 }
  0x32   : > { %p1252_p4 = pnand %p1251_p1, %p1245_p12 }
  0x34   : > { %1255 = shalt.err (!%p1252_p4)
}
  0x35   : > { %1175 = dma.hbm_to_vmem [thread:$0]  (!%p1328_p5), %s1806_s2, 256, %s1332_s24, [#allocation5], %s1274_s9, %s1274_s9, %s1275_s10  }
  0x36   : > { %p1814_p6 = scmp.ne.s32.totalorder %s1812_s22, 0 }
  0x37   : > { %p1815_p2 = scmp.eq.s32.totalorder (!%p1814_p6), %s1315_s19, 0 }
  0x38   : > { %213 = sbr.rel (%p1814_p6) target bundleno = 660 (0x294), region = 40 }
  0x3f   : > { %1261 = dma.done.wait (%p1815_p2), [#allocation3], 256   ;;  %p1816_p7 = pmov %p1815_p2 }
  0x40   : > { %p1817_p3 = pmov %p1815_p2 }
  0x41   : > { %1263 = vsyncadd (%p1816_p7), [#allocation3], 4294967040 }
  0x42   : > { %1265 = dma.done.wait (%p1817_p3), [#allocation5], 256   ;;  %p1818_p8 = pmov %p1815_p2 }
  0x43   : > { %p245_p9 = scmp.lt.s32.totalorder %s1315_s19, 1  ;;  %v1276_v0 = vmov 0.0   ;;  %v1277_v1 = vmov 0   ;;  %vm296_vm0 = vcmask 1040384   ;;  %vm1278_vm1 = vmmov 1   ;;  %v255_v9 = vld [vmem:[#allocation2] sm:$0xff] }
  0x44   : > { %1267 = vsyncadd (%p1818_p8), [#allocation5], 4294967040  ;;  %391 = vmatprep.mubr.f32.mxu0 %v1276_v0  ;;  %397 = vmatprep.mubr.f32.mxu1 %v1276_v0  ;;  %v256_v10 = vld [vmem:[#allocation2 + $0x8] sm:$0xff]  ;;  %vm289_vm3 = vcmask 72704   ;;  %v277_v35 = vld [vmem:[#allocation4] sm:$0xff]  ;;  %vm740_vm4 = vcmask 392192  }
  0x45   : > { %s1822_s19 = smov (!%p245_p9, %s1315_s19), 1  ;;  %1195 = vset.pattern.permute.xlu0 %v1277_v1  ;;  %vm1405_vm2 = vmpackc.low %vm296_vm0, %vm1278_vm1  ;;  %v278_v36 = vld [vmem:[#allocation4 + $0x8] sm:$0xff] }
  0x46   : > { %s1160_s22 = smul.u32 160, %s1822_s19  ;;  %281 = vperm.xlu0 %1195, %v277_v35  }
  0x48   : > { %s1403_s28 = scalar_lea.vmem %s1804_s0, %s1160_s22  ;;  %s1733_s14 = scalar_lea.vmem %s1809_s5, %s1160_s22 }
  0x49   : > { %v258_v3 = vld [vmem:[%s1403_s28 + $0x8] sm:$0xff]  ;;  %v268_v4 = vld [vmem:[%s1403_s28 + $0x58] sm:$0x1]  ;;  %v257_v5 = vld [vmem:[%s1403_s28] sm:$0xff] }
  0x4a   : > { %v1128_v6 = vpack.c.bf16 %v268_v4, %v258_v3  ;;  %v267_v7 = vld [vmem:[%s1403_s28 + $0x50] sm:$0x1]  ;;  %v260_v11 = vld [vmem:[%s1403_s28 + $0x18] sm:$0xff]  ;;  %v270_v12 = vld [vmem:[%s1403_s28 + $0x68] sm:$0x1]  ;;  %286 = vperm.xlu0 %1195, %v278_v36  }
  0x4b   : > { %v1131_v8 = vpack.c.bf16 %v267_v7, %v257_v5  ;;  %v262_v13 = vld [vmem:[%s1403_s28 + $0x28] sm:$0xff]  ;;  %v1134_v14 = vpack.c.bf16 %v270_v12, %v260_v11  ;;  %v272_v15 = vld [vmem:[%s1403_s28 + $0x78] sm:$0x1]  ;;  %v259_v16 = vld [vmem:[%s1403_s28 + $0x10] sm:$0xff] }
  0x4c   : > { %1130 = vmatprep.subr.msk.bf16.mxu0 %vm1405_vm2, %v1128_v6  ;;  %1158 = vmatprep.subr.msk.bf16.mxu1 %vm1405_vm2, %v1128_v6  ;;  %v269_v17 = vld [vmem:[%s1403_s28 + $0x60] sm:$0x1]  ;;  %v1140_v18 = vpack.c.bf16 %v272_v15, %v262_v13  ;;  %v271_v21 = vld [vmem:[%s1403_s28 + $0x70] sm:$0x1]  ;;  %v264_v22 = vld [vmem:[%s1403_s28 + $0x38] sm:$0xff] }
  0x4d   : > { %1133 = vmatpush1.bf16.msk.msra.mxu0 %vm1405_vm2, %v1131_v8  ;;  %1159 = vmatpush1.bf16.msk.msra.mxu1 %vm1405_vm2, %v1131_v8  ;;  %v1137_v19 = vpack.c.bf16 %v269_v17, %v259_v16  ;;  %v261_v20 = vld [vmem:[%s1403_s28 + $0x20] sm:$0xff]  ;;  %v274_v24 = vld [vmem:[%s1403_s28 + $0x88] sm:$0x1]  ;;  %v263_v25 = vld [vmem:[%s1403_s28 + $0x30] sm:$0xff] }
  0x4e   : > { %1136 = vmatprep.subr.msk.bf16.mxu1 %vm1405_vm2, %v1134_v14  ;;  %v1143_v23 = vpack.c.bf16 %v271_v21, %v261_v20  ;;  %v273_v26 = vld [vmem:[%s1403_s28 + $0x80] sm:$0x1]  ;;  %1142 = vmatprep.subr.msk.bf16.mxu0 %vm1405_vm2, %v1140_v18  ;;  %v1146_v27 = vpack.c.bf16 %v274_v24, %v264_v22  ;;  %v266_v28 = vld [vmem:[%s1403_s28 + $0x48] sm:$0xff]  ;;  %v276_v29 = vld [vmem:[%s1403_s28 + $0x98] sm:$0x1] }
  0x4f   : > { %v265_v30 = vld [vmem:[%s1403_s28 + $0x40] sm:$0xff]  ;;  %v1152_v31 = vpack.c.bf16 %v276_v29, %v266_v28  ;;  %v275_v32 = vld [vmem:[%s1403_s28 + $0x90] sm:$0x1]  ;;  %v1149_v33 = vpack.c.bf16 %v273_v26, %v263_v25 }
  0x50   : > { %1108 = vmatmul.mubr.msk.f32.vlgmr.msra.gmra.mrb[0].mxu0 %vm289_vm3, %v255_v9  ;;  %1109 = vmatmul.mubr.msk.f32.vlgmr.msra.gmra.mrb[0].mxu1 %vm289_vm3, %v256_v10  ;;  %v1155_v34 = vpack.c.bf16 %v275_v32, %v265_v30 }
  0x51   : > { %1139 = vmatpush1.bf16.msk.msra.mxu1 %vm1405_vm2, %v1137_v19  ;;  %1145 = vmatpush1.bf16.msk.msra.mxu0 %vm1405_vm2, %v1143_v23 }
  0x52   : > { %468 = vmatprep.mubr.f32.mxu1 %v1276_v0  ;;  %545 = vmatprep.mubr.f32.mxu0 %v1276_v0 }
  0x53   : > { %1148 = vmatprep.subr.msk.bf16.mxu1 %vm1405_vm2, %v1146_v27  ;;  %1154 = vmatprep.subr.msk.bf16.mxu0 %vm1405_vm2, %v1152_v31 }
  0x54   : > { %1112 = vmatmul.mubr.msk.f32.vlgmr.msra.gmra.mrb[2].mxu1 %vm289_vm3, %v255_v9  ;;  %1116 = vmatmul.mubr.msk.f32.vlgmr.msra.gmra.mrb[2].mxu0 %vm289_vm3, %v255_v9 }
  0x55   : > { %1151 = vmatpush1.bf16.msk.msra.mxu1 %vm1405_vm2, %v1149_v33  ;;  %474 = vmatprep.mubr.f32.mxu1 %v1276_v0 }
  0x56   : > { %551 = vmatprep.mubr.f32.mxu0 %v1276_v0  ;;  %1157 = vmatpush1.bf16.msk.msra.mxu0 %vm1405_vm2, %v1155_v34 }
  0x58   : > { %1113 = vmatmul.mubr.msk.f32.gmra.mrb[4].mxu1 %vm289_vm3, %v256_v10  ;;  %1117 = vmatmul.mubr.msk.f32.gmra.mrb[4].mxu0 %vm289_vm3, %v256_v10 }
  0x59   : > { %622 = vmatprep.mubr.f32.mxu1 %v1276_v0  ;;  %699 = vmatprep.mubr.f32.mxu0 %v1276_v0 }
  0x5c   : > { %1120 = vmatmul.mubr.msk.f32.vlgmr.msra.gmra.mrb[6].mxu1 %vm289_vm3, %v255_v9  ;;  %1124 = vmatmul.mubr.msk.f32.vlgmr.msra.gmra.mrb[6].mxu0 %vm289_vm3, %v255_v9 }
  0x5d   : > { %628 = vmatprep.mubr.f32.mxu1 %v1276_v0  ;;  %705 = vmatprep.mubr.f32.mxu0 %v1276_v0 }
  0x60   : > { %1121 = vmatmul.mubr.msk.f32.gmra.mrb[8].mxu1 %vm289_vm3, %v256_v10  ;;  %1125 = vmatmul.mubr.msk.f32.gmra.mrb[8].mxu0 %vm289_vm3, %v256_v10 }
  0xc5   : > { %v282_v37 = vpop.permute.xlu0 %281 }
  0xc9   : > { %v1471_v38 = vpop.permute.xlu0 %286 }
 0x123   : > { %v399_v39 = vpop.f32.mrb[0].mxu1  ;;  %v393_v40 = vpop.f32.mrb[0].mxu0 }
 0x124   : > { %v1473_v41 = vadd.f32 %v393_v40, %v282_v37  ;;  %v401_v42 = vpop.f32.mrb[1].mxu1  ;;  %v395_v43 = vpop.f32.mrb[1].mxu0  ;;  %v1476_v44 = vadd.f32 %v399_v39, %v1471_v38 }
 0x125   : > { %v1479_v45 = vadd.f32 %v401_v42, %v1471_v38  ;;  %v1481_v46 = vadd.f32 %v395_v43, %v282_v37 }
 0x126   : > { %v712_v47 = vmax.f32 %v1473_v41, 0.0  ;;  %v722_v54 = vmax.f32 %v1476_v44, 0.0 }
 0x127   : > { %v713_v48 = vmax.f32 %v1481_v46, 0.0  ;;  %v470_v49 = vpop.f32.mrb[2].mxu1  ;;  %v547_v50 = vpop.f32.mrb[2].mxu0  ;;  %v723_v55 = vmax.f32 %v1479_v45, 0.0 }
 0x128   : > { %v1485_v51 = vadd.f32 %v470_v49, %v282_v37  ;;  %v472_v52 = vpop.f32.mrb[3].mxu1  ;;  %v549_v53 = vpop.f32.mrb[3].mxu0  ;;  %v1496_v59 = vadd.f32 %v547_v50, %v282_v37 }
 0x129   : > { %v732_v56 = vadd.f32 %v713_v48, %v712_v47  ;;  %v1493_v57 = vadd.f32 %v472_v52, %v282_v37  ;;  %v1499_v61 = vadd.f32 %v549_v53, %v282_v37  ;;  %v745_v4 = vadd.f32 %v723_v55, %v722_v54 }
 0x12a   : > { %v714_v58 = vmax.f32 %v1485_v51, 0.0  ;;  %v716_v6 = vmax.f32 %v1496_v59, 0.0 }
 0x12b   : > { %v715_v60 = vmax.f32 %v1493_v57, 0.0  ;;  %v476_v62 = vpop.f32.mrb[4].mxu1  ;;  %v553_v63 = vpop.f32.mrb[4].mxu0  ;;  %v717_v10 = vmax.f32 %v1499_v61, 0.0 }
 0x12c   : > { %v733_v0 = vadd.f32 %v732_v56, %v714_v58  ;;  %v1504_v1 = vadd.f32 %v476_v62, %v1471_v38  ;;  %v478_v2 = vpop.f32.mrb[5].mxu1  ;;  %v555_v3 = vpop.f32.mrb[5].mxu0  ;;  %v1518_v9 = vadd.f32 %v553_v63, %v1471_v38 }
 0x12d   : > { %v1511_v5 = vadd.f32 %v478_v2, %v1471_v38  ;;  %v1525_v16 = vadd.f32 %v555_v3, %v1471_v38 }
 0x12e   : > { %v734_v7 = vadd.f32 %v733_v0, %v715_v60  ;;  %v724_v8 = vmax.f32 %v1504_v1, 0.0  ;;  %v726_v24 = vmax.f32 %v1518_v9, 0.0 }
 0x12f   : > { %v725_v11 = vmax.f32 %v1511_v5, 0.0  ;;  %v624_v12 = vpop.f32.mrb[6].mxu1  ;;  %v701_v13 = vpop.f32.mrb[6].mxu0  ;;  %v727_v30 = vmax.f32 %v1525_v16, 0.0 }
 0x130   : > { %v735_v14 = vadd.f32 %v734_v7, %v716_v6  ;;  %v746_v15 = vadd.f32 %v745_v4, %v724_v8  ;;  %v625_v17 = vadd.f32 %v624_v12, %v282_v37  ;;  %v626_v18 = vpop.f32.mrb[7].mxu1  ;;  %v703_v19 = vpop.f32.mrb[7].mxu0  ;;  %v1527_v20 = vadd.f32 %v701_v13, %v282_v37 }
 0x131   : > { %v1529_v21 = vadd.f32 %v626_v18, %v282_v37  ;;  %v1531_v22 = vadd.f32 %v703_v19, %v282_v37 }
 0x132   : > { %v736_v23 = vadd.f32 %v735_v14, %v717_v10  ;;  %v747_v25 = vadd.f32 %v746_v15, %v725_v11  ;;  %v718_v26 = vmax.f32 %v625_v17, 0.0  ;;  %v720_v36 = vmax.f32 %v1527_v20, 0.0 }
 0x133   : > { %v719_v27 = vmax.f32 %v1529_v21, 0.0  ;;  %v630_v28 = vpop.f32.mrb[8].mxu1  ;;  %v707_v29 = vpop.f32.mrb[8].mxu0  ;;  %v721_v37 = vmax.f32 %v1531_v22, 0.0 }
 0x134   : > { %v748_v31 = vadd.f32 %v747_v25, %v726_v24  ;;  %v737_v32 = vadd.f32 %v736_v23, %v718_v26  ;;  %v1541_v33 = vadd.f32 %v630_v28, %v1471_v38  ;;  %v632_v34 = vpop.f32.mrb[9].mxu1  ;;  %v709_v35 = vpop.f32.mrb[9].mxu0  ;;  %v1553_v50 = vadd.f32 %v707_v29, %v1471_v38 }
 0x135   : > { %v1546_v39 = vadd.f32 %v632_v34, %v1471_v38  ;;  %v1549_v40 = vadd.f32 %v709_v35, %v1471_v38  ;;  %v741_v62 = vsel %vm740_vm4, %v721_v37, 0.0 }
 0x136   : > { %v749_v42 = vadd.f32 %v748_v31, %v727_v30  ;;  %v738_v43 = vadd.f32 %v737_v32, %v719_v27  ;;  %v728_v49 = vmax.f32 %v1541_v33, 0.0  ;;  %v730_v63 = vmax.f32 %v1553_v50, 0.0 }
 0x137   : > { %v729_v52 = vmax.f32 %v1546_v39, 0.0  ;;  %v731_v59 = vmax.f32 %v1549_v40, 0.0 }
 0x138   : > { %v750_v53 = vadd.f32 %v749_v42, %v728_v49  ;;  %v739_v56 = vadd.f32 %v738_v43, %v720_v36 }
 0x139   : > { %v753_v4 = vsel %vm740_vm4, %v731_v59, 0.0 }
 0x13a   : > { %v751_v0 = vadd.f32 %v750_v53, %v729_v52  ;;  %v742_v2 = vadd.f32 %v741_v62, %v739_v56 }
 0x13c   : > { %743 = vadd.xlane.f32.xlu1 %v742_v2  ;;  %v752_v3 = vadd.f32 %v751_v0, %v730_v63 }
 0x13e   : > { %v754_v7 = vadd.f32 %v753_v4, %v752_v3 }
 0x140   : > { %755 = vadd.xlane.f32.xlu1 %v754_v7 }
 0x1c9   : > { %v744_v38 = vpop.xlane.xlu1 %743 }
 0x1ca   : > { %v758_v9 = vmul.f32 0.00083333335, %v744_v38  ;;  %v854_v38 = vlaneseq }
 0x1cc   : > { %v1562_v12 = vsub.f32 %v712_v47, %v758_v9  ;;  %v1566_v13 = vsub.f32 %v713_v48, %v758_v9  ;;  %v1570_v15 = vsub.f32 %v714_v58, %v758_v9  ;;  %v1576_v18 = vsub.f32 %v715_v60, %v758_v9 }
 0x1cd   : > { %v756_v14 = vpop.xlane.xlu1 %755  ;;  %v1580_v47 = vsub.f32 %v716_v6, %v758_v9  ;;  %v1594_v57 = vsub.f32 %v717_v10, %v758_v9  ;;  %v1602_v20 = vsub.f32 %v718_v26, %v758_v9  ;;  %v1614_v10 = vsub.f32 %v719_v27, %v758_v9 }
 0x1ce   : > { %v759_v16 = vmul.f32 0.00083333335, %v756_v14  ;;  %v780_v17 = vmul.f32 %v1562_v12, %v1562_v12  ;;  %v781_v41 = vmul.f32 %v1566_v13, %v1566_v13  ;;  %v782_v46 = vmul.f32 %v1570_v15, %v1570_v15 }
 0x1cf   : > { %v783_v60 = vmul.f32 %v1576_v18, %v1576_v18  ;;  %v785_v1 = vmul.f32 %v1594_v57, %v1594_v57  ;;  %v1622_v25 = vsub.f32 %v720_v36, %v758_v9  ;;  %v1624_v26 = vsub.f32 %v721_v37, %v758_v9 }
 0x1d0   : > { %v800_v48 = vadd.f32 %v781_v41, %v780_v17  ;;  %v1586_v51 = vsub.f32 %v722_v54, %v759_v16  ;;  %v1590_v58 = vsub.f32 %v723_v55, %v759_v16  ;;  %v1600_v19 = vsub.f32 %v724_v8, %v759_v16 }
 0x1d1   : > { %v784_v54 = vmul.f32 %v1580_v47, %v1580_v47  ;;  %v1612_v61 = vsub.f32 %v725_v11, %v759_v16  ;;  %v1618_v21 = vsub.f32 %v726_v24, %v759_v16  ;;  %v786_v5 = vmul.f32 %v1602_v20, %v1602_v20 }
 0x1d2   : > { %v801_v6 = vadd.f32 %v800_v48, %v782_v46  ;;  %v790_v44 = vmul.f32 %v1586_v51, %v1586_v51  ;;  %v791_v45 = vmul.f32 %v1590_v58, %v1590_v58  ;;  %v792_v22 = vmul.f32 %v1600_v19, %v1600_v19  ;;  %v850_v48 = vld [vmem:[%s1807_s3] sm:$0xff] }
 0x1d3   : > { %v1628_v27 = vsub.f32 %v727_v30, %v759_v16  ;;  %v793_v28 = vmul.f32 %v1612_v61, %v1612_v61  ;;  %v787_v24 = vmul.f32 %v1614_v10, %v1614_v10  ;;  %v1634_v32 = vsub.f32 %v728_v49, %v759_v16 }
 0x1d4   : > { %v802_v55 = vadd.f32 %v801_v6, %v783_v60  ;;  %v812_v23 = vadd.f32 %v791_v45, %v790_v44  ;;  %v794_v33 = vmul.f32 %v1618_v21, %v1618_v21  ;;  %v788_v35 = vmul.f32 %v1622_v25, %v1622_v25 }
 0x1d5   : > { %v789_v30 = vmul.f32 %v1624_v26, %v1624_v26  ;;  %v1642_v37 = vsub.f32 %v729_v52, %v759_v16  ;;  %v795_v39 = vmul.f32 %v1628_v27, %v1628_v27  ;;  %v1646_v42 = vsub.f32 %v731_v59, %v759_v16 }
 0x1d6   : > { %v803_v8 = vadd.f32 %v802_v55, %v784_v54  ;;  %v813_v29 = vadd.f32 %v812_v23, %v792_v22  ;;  %v1648_v49 = vsub.f32 %v730_v63, %v759_v16  ;;  %v796_v50 = vmul.f32 %v1634_v32, %v1634_v32  ;;  %v851_v23 = vld [vmem:[%s1807_s3 + $0x8] sm:$0x3] }
 0x1d7   : > { %v808_v56 = vsel %vm740_vm4, %v789_v30, 0.0  ;;  %v797_v52 = vmul.f32 %v1642_v37, %v1642_v37  ;;  %v799_v2 = vmul.f32 %v1646_v42, %v1646_v42  ;;  %v855_v16 = vshrl.u32 %v854_v38, 7  ;;  %v925_v30 = vld [vmem:[%s1808_s4 + $0x8] sm:$0x3] }
 0x1d8   : > { %v804_v11 = vadd.f32 %v803_v8, %v785_v1  ;;  %v814_v34 = vadd.f32 %v813_v29, %v793_v28  ;;  %v798_v59 = vmul.f32 %v1648_v49, %v1648_v49 }
 0x1d9   : > { %v820_v4 = vsel %vm740_vm4, %v799_v2, 0.0  ;;  %v856_v41 = vsub.s32 0, %v855_v16  ;;  %v860_v60 = vsub.s32 1, %v855_v16  ;;  %v864_v6 = vsub.s32 2, %v855_v16 }
 0x1da   : > { %v805_v31 = vadd.f32 %v804_v11, %v786_v5  ;;  %v815_v40 = vadd.f32 %v814_v34, %v794_v33  ;;  %v868_v44 = vsub.s32 3, %v855_v16  ;;  %v872_v54 = vsub.s32 4, %v855_v16  ;;  %v924_v11 = vld [vmem:[%s1808_s4] sm:$0xff] }
 0x1db   : > { %v876_v55 = vsub.s32 5, %v855_v16  ;;  %v880_v1 = vsub.s32 6, %v855_v16  ;;  %v884_v8 = vsub.s32 7, %v855_v16  ;;  %v1666_v5 = vrot.slane %v850_v48, %v856_v41 }
 0x1dc   : > { %v806_v36 = vadd.f32 %v805_v31, %v787_v24  ;;  %v816_v53 = vadd.f32 %v815_v40, %v795_v39  ;;  %v1671_v28 = vrot.slane %v850_v48, %v860_v60  ;;  %v1673_v29 = vrot.slane %v850_v48, %v864_v6 }
 0x1dd   : > { %v1675_v24 = vrot.slane %v850_v48, %v868_v44  ;;  %v1677_v31 = vrot.slane %v850_v48, %v872_v54  ;;  %v1679_v33 = vrot.slane %v850_v48, %v876_v55  ;;  %v1681_v34 = vrot.slane %v850_v48, %v880_v1 }
 0x1de   : > { %v807_v43 = vadd.f32 %v806_v36, %v788_v35  ;;  %v817_v0 = vadd.f32 %v816_v53, %v796_v50  ;;  %v1683_v35 = vrot.slane %v850_v48, %v884_v8  ;;  %v1688_v36 = vrot.slane %v851_v23, %v856_v41 }
 0x1df   : > { %v1690_v39 = vrot.slane %v851_v23, %v860_v60  ;;  %v1692_v40 = vrot.slane %v924_v11, %v856_v41  ;;  %v1696_v50 = vrot.slane %v924_v11, %v864_v6  ;;  %v1698_v53 = vrot.slane %v924_v11, %v868_v44 }
 0x1e0   : > { %v809_v62 = vadd.f32 %v808_v56, %v807_v43  ;;  %v818_v63 = vadd.f32 %v817_v0, %v797_v52  ;;  %v1694_v43 = vrot.slane %v924_v11, %v860_v60  ;;  %v1700_v56 = vrot.slane %v924_v11, %v872_v54 }
 0x1e1   : > { %v1704_v0 = vrot.slane %v924_v11, %v880_v1  ;;  %v1706_v2 = vrot.slane %v924_v11, %v884_v8 }
 0x1e2   : > { %810 = vadd.xlane.f32.xlu0 %v809_v62  ;;  %v819_v3 = vadd.f32 %v818_v63, %v798_v59  ;;  %v1702_v62 = vrot.slane %v924_v11, %v876_v55  ;;  %v1708_v59 = vrot.slane %v925_v30, %v856_v41  ;;  %v1710_v63 = vrot.slane %v925_v30, %v860_v60 }
 0x1e4   : > { %v821_v7 = vadd.f32 %v820_v4, %v819_v3 }
 0x1e6   : > { %822 = vadd.xlane.f32.xlu1 %v821_v7 }
 0x26f   : > { %v811_v9 = vpop.xlane.xlu0 %810 }
 0x270   : > { %v824_v14 = vmul.f32 0.00083333335, %v811_v9 }
 0x272   : > { %v826_v17 = vadd.f32 1e-05, %v824_v14 }
 0x273   : > { %v823_v46 = vpop.xlane.xlu1 %822 }
 0x274   : > { %1196 = vrsqrt.f32 %v826_v17  ;;  %v825_v45 = vmul.f32 0.00083333335, %v823_v46 }
 0x276   : > { %v827_v22 = vadd.f32 1e-05, %v825_v45 }
 0x278   : > { %1198 = vrsqrt.f32 %v827_v22 }
 0x27e   : > { %v1197_v52 = vpop.eup %1196 }
 0x27f   : > { %v830_v3 = vmul.f32 %v1197_v52, %v1562_v12  ;;  %v831_v4 = vmul.f32 %v1197_v52, %v1566_v13  ;;  %v832_v7 = vmul.f32 %v1197_v52, %v1570_v15  ;;  %v833_v38 = vmul.f32 %v1197_v52, %v1576_v18 }
 0x280   : > { %v834_v9 = vmul.f32 %v1197_v52, %v1580_v47  ;;  %v835_v14 = vmul.f32 %v1197_v52, %v1594_v57  ;;  %v836_v16 = vmul.f32 %v1197_v52, %v1602_v20  ;;  %v837_v17 = vmul.f32 %v1197_v52, %v1614_v10 }
 0x281   : > { %v838_v41 = vmul.f32 %v1197_v52, %v1622_v25  ;;  %v839_v46 = vmul.f32 %v1197_v52, %v1624_v26  ;;  %v904_v12 = vmul.f32 %v1666_v5, %v830_v3  ;;  %v905_v13 = vmul.f32 %v1671_v28, %v831_v4 }
 0x282   : > { %v906_v15 = vmul.f32 %v1673_v29, %v832_v7  ;;  %v907_v18 = vmul.f32 %v1675_v24, %v833_v38  ;;  %v908_v47 = vmul.f32 %v1677_v31, %v834_v9  ;;  %v909_v57 = vmul.f32 %v1679_v33, %v835_v14  ;;  %v1199_v48 = vpop.eup %1198 }
 0x283   : > { %v910_v20 = vmul.f32 %v1681_v34, %v836_v16  ;;  %v911_v10 = vmul.f32 %v1683_v35, %v837_v17  ;;  %v912_v25 = vmul.f32 %v1688_v36, %v838_v41  ;;  %v913_v26 = vmul.f32 %v1690_v39, %v839_v46 }
 0x284   : > { %v978_v60 = vadd.f32 %v1692_v40, %v904_v12  ;;  %v979_v6 = vadd.f32 %v1694_v43, %v905_v13  ;;  %v980_v44 = vadd.f32 %v1696_v50, %v906_v15  ;;  %v981_v45 = vadd.f32 %v1698_v53, %v907_v18 }
 0x285   : > { %v982_v54 = vadd.f32 %v1700_v56, %v908_v47  ;;  %v983_v55 = vadd.f32 %v1702_v62, %v909_v57  ;;  %v984_v1 = vadd.f32 %v1704_v0, %v910_v20  ;;  %v985_v8 = vadd.f32 %v1706_v2, %v911_v10 }
 0x286   : > { %v986_v22 = vadd.f32 %v1708_v59, %v912_v25  ;;  %v987_v23 = vadd.f32 %v1710_v63, %v913_v26  ;;  %998 = vst [vmem:[%s1733_s14] sm:$0xff] %v978_v60  ;;  %999 = vst [vmem:[%s1733_s14 + $0x8] sm:$0xff] %v979_v6  ;;  %v840_v11 = vmul.f32 %v1199_v48, %v1586_v51 }
 0x287   : > { %1000 = vst [vmem:[%s1733_s14 + $0x10] sm:$0xff] %v980_v44  ;;  %1001 = vst [vmem:[%s1733_s14 + $0x18] sm:$0xff] %v981_v45  ;;  %v841_v30 = vmul.f32 %v1199_v48, %v1590_v58  ;;  %v842_v52 = vmul.f32 %v1199_v48, %v1600_v19  ;;  %v843_v3 = vmul.f32 %v1199_v48, %v1612_v61 }
 0x288   : > { %1002 = vst [vmem:[%s1733_s14 + $0x20] sm:$0xff] %v982_v54  ;;  %1003 = vst [vmem:[%s1733_s14 + $0x28] sm:$0xff] %v983_v55  ;;  %v844_v4 = vmul.f32 %v1199_v48, %v1618_v21  ;;  %v845_v7 = vmul.f32 %v1199_v48, %v1628_v27  ;;  %v846_v38 = vmul.f32 %v1199_v48, %v1634_v32 }
 0x289   : > { %1004 = vst [vmem:[%s1733_s14 + $0x30] sm:$0xff] %v984_v1  ;;  %1005 = vst [vmem:[%s1733_s14 + $0x38] sm:$0xff] %v985_v8  ;;  %v847_v51 = vmul.f32 %v1199_v48, %v1642_v37  ;;  %v848_v58 = vmul.f32 %v1199_v48, %v1648_v49  ;;  %v849_v9 = vmul.f32 %v1199_v48, %v1646_v42 }
 0x28a   : > { %1006 = vst [vmem:[%s1733_s14 + $0x40] sm:$0xff] %v986_v22  ;;  %1007 = vst.msk [vmem:[%s1733_s14 + $0x48] sm:$0xff] %vm740_vm4, %v987_v23  ;;  %v914_v14 = vmul.f32 %v1666_v5, %v840_v11  ;;  %v915_v19 = vmul.f32 %v1671_v28, %v841_v30  ;;  %v916_v61 = vmul.f32 %v1673_v29, %v842_v52 }
 0x28b   : > { %v917_v21 = vmul.f32 %v1675_v24, %v843_v3  ;;  %v918_v27 = vmul.f32 %v1677_v31, %v844_v4  ;;  %v919_v16 = vmul.f32 %v1679_v33, %v845_v7  ;;  %v920_v32 = vmul.f32 %v1681_v34, %v846_v38 }
 0x28c   : > { %v921_v37 = vmul.f32 %v1683_v35, %v847_v51  ;;  %v922_v42 = vmul.f32 %v1688_v36, %v848_v58  ;;  %v923_v49 = vmul.f32 %v1690_v39, %v849_v9  ;;  %v988_v5 = vadd.f32 %v1692_v40, %v914_v14 }
 0x28d   : > { %v989_v28 = vadd.f32 %v1694_v43, %v915_v19  ;;  %v990_v29 = vadd.f32 %v1696_v50, %v916_v61  ;;  %v991_v24 = vadd.f32 %v1698_v53, %v917_v21  ;;  %v992_v31 = vadd.f32 %v1700_v56, %v918_v27 }
 0x28e   : > { %v993_v33 = vadd.f32 %v1702_v62, %v919_v16  ;;  %v994_v34 = vadd.f32 %v1704_v0, %v920_v32  ;;  %v995_v35 = vadd.f32 %v1706_v2, %v921_v37  ;;  %v996_v36 = vadd.f32 %v1708_v59, %v922_v42  ;;  %1008 = vst [vmem:[%s1733_s14 + $0x50] sm:$0xff] %v988_v5 }
 0x28f   : > { %v997_v39 = vadd.f32 %v1710_v63, %v923_v49  ;;  %1009 = vst [vmem:[%s1733_s14 + $0x58] sm:$0xff] %v989_v28  ;;  %1010 = vst [vmem:[%s1733_s14 + $0x60] sm:$0xff] %v990_v29 }
 0x290   : > { %1011 = vst [vmem:[%s1733_s14 + $0x68] sm:$0xff] %v991_v24  ;;  %1012 = vst [vmem:[%s1733_s14 + $0x70] sm:$0xff] %v992_v31 }
 0x291   : > { %1013 = vst [vmem:[%s1733_s14 + $0x78] sm:$0xff] %v993_v33  ;;  %1014 = vst [vmem:[%s1733_s14 + $0x80] sm:$0xff] %v994_v34 }
 0x292   : > { %1015 = vst [vmem:[%s1733_s14 + $0x88] sm:$0xff] %v995_v35  ;;  %1016 = vst [vmem:[%s1733_s14 + $0x90] sm:$0xff] %v996_v36 }
 0x293   : > { %1017 = vst.msk [vmem:[%s1733_s14 + $0x98] sm:$0xff] %vm740_vm4, %v997_v39 }
 0x294 PF: > { %s17_s18 = sadd.s32 1, %s1270_s18  }
 0x295   : > { %p14_p5 = scmp.ge.s32.totalorder %s17_s18, 4  }
 0x297   :  { %16 = sbr.rel (!%p14_p5) target bundleno = 2 (0x2), region = 79 }
 0x29e   :  { %1039 = vsyncpa [#allocation3], 1 }
 0x29f   :  { %1041 = vsyncpa [#allocation3 + $0x1], 1 }
 0x2a0   :  { %1042 = vsyncpa [#allocation5], 1 }

// kernel: _lambda_.4
= control target key start
LH: loop header
LB: loop body
LE: loop exit
PB: predicated region body
PF: predicated region fallthrough
CT: control target
= control target key end

     0   :  { %s871_s18 = smov 0   ;;  %s1093_s0 = inlined_call_operand.vmem [shape: f32[2,144,300], index: 0, kind: input, shape index: {}]   ;;  %s1094_s1 = inlined_call_operand.vmem [shape: f32[32,144], index: 1, kind: input, shape index: {}]   ;;  %s1095_s2 = inlined_call_operand.vmem [shape: f32[32,1], index: 2, kind: input, shape index: {}]   ;;  %s1096_s3 = inlined_call_operand.vmem [shape: f32[1,300], index: 3, kind: input, shape index: {}]   ;;  %s1097_s4 = inlined_call_operand.vmem [shape: f32[1,300], index: 4, kind: input, shape index: {}]   ;;  %s1098_s5 = inlined_call_operand.vmem [shape: f32[2,32,300], index: 5, kind: output, shape index: {}]  }
   0x1 LB: > { %s729_s19 = sadd.s32 4294967295, %s837_s18   ;;  %p733_p0 = scmp.ge.s32.totalorder %s837_s18, 1  ;;  %s837_s18 = sphi %s871_s18, %s15_s18  }
   0x2   : > { %p187_p1 = scmp.lt.s32.totalorder %s837_s18, 3 }
   0x4   : > { %p188_p2 = pnand %p733_p0, %p187_p1 }
   0x5   : > { %p215_p3 = scmp.lt.s32.totalorder (!%p188_p2), %s729_s19, 1  ;;  %v226_v0 = vld [vmem:[%s1094_s1 + $0x8] sm:$0xff] (!%p188_p2)  ;;  %vm311_vm0 = vcmask (!%p188_p2), 130048   ;;  %v839_v1 = vmov (!%p188_p2), 0.0|0.0   ;;  %v840_v2 = vmov (!%p188_p2), 0   ;;  %v287_v3 = vld [vmem:[%s1095_s2] sm:$0xff] (!%p188_p2) }
   0x6   : > { %191 = sbr.rel (%p188_p2) target bundleno = 606 (0x25e), region = 40  ;;  %782 = vmatprep.subr.bf16.mxu1 (!%p188_p2), %v839_v1  ;;  %740 = vmatprep.mubr.msk.f32.mxu1 (!%p188_p2), %vm311_vm0, %v226_v0  ;;  %v289_v4 = vld [vmem:[%s1095_s2 + $0x10] sm:$0xff] (!%p188_p2)  ;;  %v288_v5 = vld [vmem:[%s1095_s2 + $0x8] sm:$0xff] (!%p188_p2)  ;;  %v290_v6 = vld [vmem:[%s1095_s2 + $0x18] sm:$0xff] (!%p188_p2)  ;;  %vm511_vm1 = vcmask (!%p188_p2), 359424  }
   0x7   : > { %736 = vmatprep.mubr.msk.f32.mxu0 (!%p188_p2), %vm311_vm0, %v226_v0  ;;  %821 = vset.pattern.permute.xlu0 (!%p188_p2), %v840_v2 }
   0x8   : > { %293 = vperm.xlu0 (!%p188_p2), %821, %v287_v3   ;;  %822 = vset.pattern.permute.xlu1 (!%p188_p2), %v840_v2 }
   0x9   : > { %303 = vperm.xlu1 (!%p188_p2), %822, %v289_v4  }
   0xc   : > { %298 = vperm.xlu0 (!%p188_p2), %821, %v288_v5  }
   0xd   : > { %s1100_s19 = smov (!%p215_p3, %s729_s19), 1  ;;  %308 = vperm.xlu1 %822, %v290_v6  }
   0xe   : > { %s809_s26 = smul.u32 432, %s1100_s19 }
   0xf   : > { %s810_s29 = smul.u32 96, %s1100_s19 }
  0x10   : > { %s903_s8 = scalar_lea.vmem %s1093_s0, %s809_s26 }
  0x11   : > { %v234_v7 = vld [vmem:[%s903_s8 + $0x8] sm:$0xff]  ;;  %v237_v8 = vld [vmem:[%s903_s8 + $0x20] sm:$0xff]  ;;  %v235_v9 = vld [vmem:[%s903_s8 + $0x10] sm:$0xff]  ;;  %s1063_s7 = scalar_lea.vmem %s1098_s5, %s810_s29 }
  0x12   : > { %v746_v10 = vpack.c.bf16 %v237_v8, %v234_v7  ;;  %v238_v11 = vld [vmem:[%s903_s8 + $0x28] sm:$0xff]  ;;  %v233_v12 = vld [vmem:[%s903_s8] sm:$0xff]  ;;  %v236_v13 = vld [vmem:[%s903_s8 + $0x18] sm:$0xff] }
  0x13   : > { %v783_v14 = vpack.c.bf16 %v238_v11, %v235_v9  ;;  %v748_v15 = vpack.c.bf16 %v236_v13, %v233_v12  ;;  %v240_v16 = vld [vmem:[%s903_s8 + $0x38] sm:$0xff]  ;;  %v243_v17 = vld [vmem:[%s903_s8 + $0x50] sm:$0xff]  ;;  %v241_v18 = vld [vmem:[%s903_s8 + $0x40] sm:$0xff] }
  0x14   : > { %747 = vmatprep.subr.bf16.mxu0 %v746_v10  ;;  %v750_v19 = vpack.c.bf16 %v243_v17, %v240_v16  ;;  %v244_v20 = vld [vmem:[%s903_s8 + $0x58] sm:$0xff]  ;;  %v239_v21 = vld [vmem:[%s903_s8 + $0x30] sm:$0xff]  ;;  %v242_v22 = vld [vmem:[%s903_s8 + $0x48] sm:$0xff] }
  0x15   : > { %784 = vmatpush1.bf16.msra.mxu1 %v783_v14  ;;  %749 = vmatpush1.bf16.msra.mxu0 %v748_v15  ;;  %v786_v23 = vpack.c.bf16 %v244_v20, %v241_v18  ;;  %v752_v24 = vpack.c.bf16 %v242_v22, %v239_v21  ;;  %v246_v25 = vld [vmem:[%s903_s8 + $0x68] sm:$0xff]  ;;  %v249_v26 = vld [vmem:[%s903_s8 + $0x80] sm:$0xff]  ;;  %v247_v27 = vld [vmem:[%s903_s8 + $0x70] sm:$0xff] }
  0x16   : > { %785 = vmatprep.subr.bf16.mxu1 %v839_v1  ;;  %751 = vmatprep.subr.bf16.mxu0 %v750_v19  ;;  %v754_v28 = vpack.c.bf16 %v249_v26, %v246_v25  ;;  %v250_v29 = vld [vmem:[%s903_s8 + $0x88] sm:$0xff]  ;;  %v245_v30 = vld [vmem:[%s903_s8 + $0x60] sm:$0xff]  ;;  %v248_v31 = vld [vmem:[%s903_s8 + $0x78] sm:$0xff] }
  0x17   : > { %v252_v32 = vld [vmem:[%s903_s8 + $0x98] sm:$0xff]  ;;  %v255_v33 = vld [vmem:[%s903_s8 + $0xb0] sm:$0xff]  ;;  %v789_v34 = vpack.c.bf16 %v250_v29, %v247_v27  ;;  %v756_v35 = vpack.c.bf16 %v248_v31, %v245_v30  ;;  %v253_v36 = vld [vmem:[%s903_s8 + $0xa0] sm:$0xff] }
  0x18   : > { %v758_v37 = vpack.c.bf16 %v255_v33, %v252_v32  ;;  %v256_v38 = vld [vmem:[%s903_s8 + $0xb8] sm:$0xff]  ;;  %v251_v39 = vld [vmem:[%s903_s8 + $0x90] sm:$0xff]  ;;  %v254_v40 = vld [vmem:[%s903_s8 + $0xa8] sm:$0xff] }
  0x19   : > { %787 = vmatpush1.bf16.msra.mxu1 %v786_v23  ;;  %753 = vmatpush1.bf16.msra.mxu0 %v752_v24  ;;  %v258_v41 = vld [vmem:[%s903_s8 + $0xc8] sm:$0xff]  ;;  %v261_v42 = vld [vmem:[%s903_s8 + $0xe0] sm:$0xff]  ;;  %v792_v43 = vpack.c.bf16 %v256_v38, %v253_v36  ;;  %v760_v44 = vpack.c.bf16 %v254_v40, %v251_v39  ;;  %v259_v45 = vld [vmem:[%s903_s8 + $0xd0] sm:$0xff] }
  0x1a   : > { %788 = vmatprep.subr.bf16.mxu1 %v839_v1  ;;  %755 = vmatprep.subr.bf16.mxu0 %v754_v28  ;;  %v762_v46 = vpack.c.bf16 %v261_v42, %v258_v41  ;;  %v262_v47 = vld [vmem:[%s903_s8 + $0xe8] sm:$0xff]  ;;  %v257_v48 = vld [vmem:[%s903_s8 + $0xc0] sm:$0xff]  ;;  %v260_v49 = vld [vmem:[%s903_s8 + $0xd8] sm:$0xff] }
  0x1b   : > { %v264_v50 = vld [vmem:[%s903_s8 + $0xf8] sm:$0xff]  ;;  %v267_v51 = vld [vmem:[%s903_s8 + $0x110] sm:$0xff]  ;;  %v795_v52 = vpack.c.bf16 %v262_v47, %v259_v45  ;;  %v764_v53 = vpack.c.bf16 %v260_v49, %v257_v48  ;;  %v265_v54 = vld [vmem:[%s903_s8 + $0x100] sm:$0xff] }
  0x1c   : > { %v766_v55 = vpack.c.bf16 %v267_v51, %v264_v50  ;;  %v268_v56 = vld [vmem:[%s903_s8 + $0x118] sm:$0xff]  ;;  %v263_v57 = vld [vmem:[%s903_s8 + $0xf0] sm:$0xff]  ;;  %v266_v58 = vld [vmem:[%s903_s8 + $0x108] sm:$0xff] }
  0x1d   : > { %790 = vmatpush1.bf16.msra.mxu1 %v789_v34  ;;  %757 = vmatpush1.bf16.msra.mxu0 %v756_v35  ;;  %v270_v59 = vld [vmem:[%s903_s8 + $0x128] sm:$0xff]  ;;  %v273_v60 = vld [vmem:[%s903_s8 + $0x140] sm:$0xff]  ;;  %v798_v61 = vpack.c.bf16 %v268_v56, %v265_v54  ;;  %v768_v62 = vpack.c.bf16 %v266_v58, %v263_v57  ;;  %v271_v63 = vld [vmem:[%s903_s8 + $0x130] sm:$0xff] }
  0x1e   : > { %791 = vmatprep.subr.bf16.mxu1 %v839_v1  ;;  %759 = vmatprep.subr.bf16.mxu0 %v758_v37  ;;  %v770_v0 = vpack.c.bf16 %v273_v60, %v270_v59  ;;  %v274_v2 = vld [vmem:[%s903_s8 + $0x148] sm:$0xff]  ;;  %v269_v3 = vld [vmem:[%s903_s8 + $0x120] sm:$0xff]  ;;  %v272_v4 = vld [vmem:[%s903_s8 + $0x138] sm:$0xff] }
  0x1f   : > { %v276_v5 = vld [vmem:[%s903_s8 + $0x158] sm:$0xff]  ;;  %v279_v6 = vld [vmem:[%s903_s8 + $0x170] sm:$0xff]  ;;  %v801_v7 = vpack.c.bf16 %v274_v2, %v271_v63  ;;  %v772_v8 = vpack.c.bf16 %v272_v4, %v269_v3  ;;  %v277_v9 = vld [vmem:[%s903_s8 + $0x160] sm:$0xff] }
  0x20   : > { %v774_v10 = vpack.c.bf16 %v279_v6, %v276_v5  ;;  %v280_v11 = vld [vmem:[%s903_s8 + $0x178] sm:$0xff]  ;;  %v275_v12 = vld [vmem:[%s903_s8 + $0x150] sm:$0xff]  ;;  %v278_v13 = vld [vmem:[%s903_s8 + $0x168] sm:$0xff] }
  0x21   : > { %793 = vmatpush1.bf16.msra.mxu1 %v792_v43  ;;  %761 = vmatpush1.bf16.msra.mxu0 %v760_v44  ;;  %v282_v14 = vld [vmem:[%s903_s8 + $0x188] sm:$0xff]  ;;  %v285_v15 = vld [vmem:[%s903_s8 + $0x1a0] sm:$0xff]  ;;  %v804_v16 = vpack.c.bf16 %v280_v11, %v277_v9  ;;  %v776_v17 = vpack.c.bf16 %v278_v13, %v275_v12  ;;  %v283_v18 = vld [vmem:[%s903_s8 + $0x190] sm:$0xff] }
  0x22   : > { %794 = vmatprep.subr.bf16.mxu1 %v839_v1  ;;  %763 = vmatprep.subr.bf16.mxu0 %v762_v46  ;;  %v778_v19 = vpack.c.bf16 %v285_v15, %v282_v14  ;;  %v286_v20 = vld [vmem:[%s903_s8 + $0x1a8] sm:$0xff]  ;;  %v281_v21 = vld [vmem:[%s903_s8 + $0x180] sm:$0xff]  ;;  %v284_v22 = vld [vmem:[%s903_s8 + $0x198] sm:$0xff] }
  0x23   : > { %v807_v23 = vpack.c.bf16 %v286_v20, %v283_v18  ;;  %v780_v24 = vpack.c.bf16 %v284_v22, %v281_v21  ;;  %v225_v25 = vld [vmem:[%s1094_s1] sm:$0xff]  ;;  %v228_v26 = vld [vmem:[%s1094_s1 + $0x18] sm:$0xff]  ;;  %v230_v27 = vld [vmem:[%s1094_s1 + $0x28] sm:$0xff] }
  0x24   : > { %v229_v28 = vld [vmem:[%s1094_s1 + $0x20] sm:$0xff]  ;;  %v232_v29 = vld [vmem:[%s1094_s1 + $0x38] sm:$0xff]  ;;  %v231_v30 = vld [vmem:[%s1094_s1 + $0x30] sm:$0xff] }
  0x25   : > { %796 = vmatpush1.bf16.msra.mxu1 %v795_v52  ;;  %765 = vmatpush1.bf16.msra.mxu0 %v764_v53 }
  0x26   : > { %797 = vmatprep.subr.bf16.mxu1 %v839_v1  ;;  %767 = vmatprep.subr.bf16.mxu0 %v766_v55 }
  0x29   : > { %799 = vmatpush1.bf16.msra.mxu1 %v798_v61  ;;  %769 = vmatpush1.bf16.msra.mxu0 %v768_v62 }
  0x2a   : > { %800 = vmatprep.subr.bf16.mxu1 %v839_v1  ;;  %771 = vmatprep.subr.bf16.mxu0 %v770_v0 }
  0x2d   : > { %802 = vmatpush1.bf16.msra.mxu1 %v801_v7  ;;  %773 = vmatpush1.bf16.msra.mxu0 %v772_v8 }
  0x2e   : > { %803 = vmatprep.subr.bf16.mxu1 %v839_v1  ;;  %775 = vmatprep.subr.bf16.mxu0 %v774_v10 }
  0x31   : > { %805 = vmatpush1.bf16.msra.mxu1 %v804_v16  ;;  %777 = vmatpush1.bf16.msra.mxu0 %v776_v17 }
  0x32   : > { %806 = vmatprep.subr.bf16.mxu1 %v839_v1  ;;  %779 = vmatprep.subr.bf16.mxu0 %v778_v19  ;;  %v227_v1 = vld [vmem:[%s1094_s1 + $0x10] sm:$0xff] }
  0x35   : > { %808 = vmatpush1.bf16.msra.mxu1 %v807_v23  ;;  %781 = vmatpush1.bf16.msra.mxu0 %v780_v24 }
  0x38   : > { %478 = vmatmul.mubr.f32.vlgmr.msra.gmra.mrb[0].mxu1 %v225_v25  ;;  %389 = vmatmul.mubr.f32.vlgmr.msra.gmra.mrb[0].mxu0 %v225_v25 }
  0x39   : > { %741 = vmatprep.mubr.msk.f32.mxu1 %vm311_vm0, %v228_v26  ;;  %737 = vmatprep.mubr.msk.f32.mxu0 %vm311_vm0, %v228_v26 }
  0x3c   : > { %483 = vmatmul.mubr.f32.gmra.mrb[2].mxu1 %v227_v1  ;;  %395 = vmatmul.mubr.f32.gmra.mrb[2].mxu0 %v227_v1 }
  0x3d   : > { %742 = vmatprep.mubr.msk.f32.mxu1 %vm311_vm0, %v230_v27  ;;  %738 = vmatprep.mubr.msk.f32.mxu0 %vm311_vm0, %v230_v27 }
  0x40   : > { %488 = vmatmul.mubr.f32.gmra.mrb[4].mxu1 %v229_v28  ;;  %401 = vmatmul.mubr.f32.gmra.mrb[4].mxu0 %v229_v28 }
  0x41   : > { %743 = vmatprep.mubr.msk.f32.mxu1 %vm311_vm0, %v232_v29  ;;  %739 = vmatprep.mubr.msk.f32.mxu0 %vm311_vm0, %v232_v29 }
  0x44   : > { %493 = vmatmul.mubr.f32.gmra.mrb[6].mxu1 %v231_v30  ;;  %407 = vmatmul.mubr.f32.gmra.mrb[6].mxu0 %v231_v30 }
  0x87   : > { %v294_v31 = vpop.permute.xlu0 %293 }
  0x88   : > { %v304_v42 = vpop.permute.xlu1 %303 }
  0x8b   : > { %v299_v39 = vpop.permute.xlu0 %298 }
  0x8c   : > { %v309_v4 = vpop.permute.xlu1 %308 }
 0x10b   : > { %v390_v32 = vpop.f32.mrb[0].mxu0  ;;  %v479_v33 = vpop.f32.mrb[0].mxu1 }
 0x10c   : > { %v391_v34 = vadd.f32 %v390_v32, %v294_v31  ;;  %v392_v35 = vpop.f32.mrb[1].mxu0  ;;  %v480_v36 = vadd.f32 %v479_v33, %v294_v31  ;;  %v481_v37 = vpop.f32.mrb[1].mxu1 }
 0x10d   : > { %v393_v38 = vadd.f32 %v392_v35, %v294_v31 }
 0x10e   : > { %v498_v40 = vmax.f32 %v391_v34, 0.0  ;;  %v500_v41 = vmax.f32 %v480_v36, 0.0 }
 0x10f   : > { %v499_v43 = vmax.f32 %v393_v38, 0.0  ;;  %v396_v44 = vpop.f32.mrb[2].mxu0  ;;  %v484_v45 = vpop.f32.mrb[2].mxu1 }
 0x110   : > { %v397_v46 = vadd.f32 %v396_v44, %v299_v39  ;;  %v398_v47 = vpop.f32.mrb[3].mxu0  ;;  %v485_v48 = vadd.f32 %v484_v45, %v299_v39  ;;  %v486_v49 = vpop.f32.mrb[3].mxu1  ;;  %v512_v50 = vsel %vm511_vm1, %v500_v41, 0.0 }
 0x111   : > { %v510_v51 = vadd.f32 %v499_v43, %v498_v40  ;;  %v399_v52 = vadd.f32 %v398_v47, %v299_v39 }
 0x112   : > { %v501_v53 = vmax.f32 %v397_v46, 0.0  ;;  %v503_v54 = vmax.f32 %v485_v48, 0.0 }
 0x113   : > { %v502_v55 = vmax.f32 %v399_v52, 0.0  ;;  %v402_v56 = vpop.f32.mrb[4].mxu0  ;;  %v489_v57 = vpop.f32.mrb[4].mxu1  ;;  %v513_v58 = vadd.f32 %v512_v50, %v510_v51 }
 0x114   : > { %v403_v59 = vadd.f32 %v402_v56, %v304_v42  ;;  %v404_v60 = vpop.f32.mrb[5].mxu0  ;;  %v490_v61 = vadd.f32 %v489_v57, %v304_v42  ;;  %v491_v62 = vpop.f32.mrb[5].mxu1  ;;  %v517_v63 = vsel %vm511_vm1, %v503_v54, 0.0 }
 0x115   : > { %v516_v0 = vadd.f32 %v502_v55, %v501_v53  ;;  %v405_v2 = vadd.f32 %v404_v60, %v304_v42  ;;  %514 = vadd.xlane.f32.xlu0 %v513_v58 }
 0x116   : > { %v504_v3 = vmax.f32 %v403_v59, 0.0  ;;  %v506_v5 = vmax.f32 %v490_v61, 0.0 }
 0x117   : > { %v505_v6 = vmax.f32 %v405_v2, 0.0  ;;  %v494_v7 = vpop.f32.mrb[6].mxu1  ;;  %v408_v8 = vpop.f32.mrb[6].mxu0  ;;  %v518_v9 = vadd.f32 %v517_v63, %v516_v0 }
 0x118   : > { %v495_v10 = vadd.f32 %v494_v7, %v309_v4  ;;  %v409_v11 = vadd.f32 %v408_v8, %v309_v4  ;;  %v410_v12 = vpop.f32.mrb[7].mxu0  ;;  %v496_v13 = vpop.f32.mrb[7].mxu1  ;;  %v522_v14 = vsel %vm511_vm1, %v506_v5, 0.0 }
 0x119   : > { %v521_v15 = vadd.f32 %v505_v6, %v504_v3  ;;  %v411_v16 = vadd.f32 %v410_v12, %v309_v4  ;;  %519 = vadd.xlane.f32.xlu1 %v518_v9 }
 0x11a   : > { %v509_v17 = vmax.f32 %v495_v10, 0.0  ;;  %v507_v18 = vmax.f32 %v409_v11, 0.0 }
 0x11b   : > { %v508_v19 = vmax.f32 %v411_v16, 0.0  ;;  %v523_v20 = vadd.f32 %v522_v14, %v521_v15 }
 0x11c   : > { %v527_v22 = vsel %vm511_vm1, %v509_v17, 0.0 }
 0x11d   : > { %v526_v21 = vadd.f32 %v508_v19, %v507_v18  ;;  %524 = vadd.xlane.f32.xlu0 %v523_v20 }
 0x11f   : > { %v528_v23 = vadd.f32 %v527_v22, %v526_v21 }
 0x121   : > { %529 = vadd.xlane.f32.xlu0 %v528_v23 }
 0x1a2   : > { %v515_v24 = vpop.xlane.xlu0 %514 }
 0x1a3   : > { %v532_v25 = vmul.f32 0.0033333334, %v515_v24 }
 0x1a5   : > { %v998_v26 = vsub.f32 %v498_v40, %v532_v25  ;;  %v1000_v1 = vsub.f32 %v499_v43, %v532_v25  ;;  %v1002_v27 = vsub.f32 %v500_v41, %v532_v25 }
 0x1a6   : > { %v520_v28 = vpop.xlane.xlu1 %519 }
 0x1a7   : > { %v533_v29 = vmul.f32 0.0033333334, %v520_v28  ;;  %v548_v30 = vmul.f32 %v998_v26, %v998_v26  ;;  %v549_v31 = vmul.f32 %v1000_v1, %v1000_v1  ;;  %v550_v32 = vmul.f32 %v1002_v27, %v1002_v27 }
 0x1a9   : > { %v1010_v33 = vsub.f32 %v501_v53, %v533_v29  ;;  %v1012_v34 = vsub.f32 %v502_v55, %v533_v29  ;;  %v1014_v35 = vsub.f32 %v503_v54, %v533_v29  ;;  %v560_v36 = vadd.f32 %v549_v31, %v548_v30 }
 0x1aa   : > { %v525_v37 = vpop.xlane.xlu0 %524  ;;  %v561_v38 = vsel %vm511_vm1, %v550_v32, 0.0 }
 0x1ab   : > { %v534_v39 = vmul.f32 0.0033333334, %v525_v37  ;;  %v562_v40 = vadd.f32 %v561_v38, %v560_v36  ;;  %v551_v41 = vmul.f32 %v1010_v33, %v1010_v33  ;;  %v552_v42 = vmul.f32 %v1012_v34, %v1012_v34 }
 0x1ac   : > { %v553_v43 = vmul.f32 %v1014_v35, %v1014_v35 }
 0x1ad   : > { %v1023_v44 = vsub.f32 %v504_v3, %v534_v39  ;;  %v1025_v45 = vsub.f32 %v505_v6, %v534_v39  ;;  %v1027_v46 = vsub.f32 %v506_v5, %v534_v39  ;;  %563 = vadd.xlane.f32.xlu1 %v562_v40  ;;  %v565_v47 = vadd.f32 %v552_v42, %v551_v41 }
 0x1ae   : > { %v530_v48 = vpop.xlane.xlu0 %529  ;;  %v566_v49 = vsel %vm511_vm1, %v553_v43, 0.0  ;;  %v606_v6 = vlaneseq }
 0x1af   : > { %v535_v50 = vmul.f32 0.0033333334, %v530_v48  ;;  %v567_v51 = vadd.f32 %v566_v49, %v565_v47  ;;  %v554_v52 = vmul.f32 %v1023_v44, %v1023_v44  ;;  %v555_v53 = vmul.f32 %v1025_v45, %v1025_v45 }
 0x1b0   : > { %v556_v54 = vmul.f32 %v1027_v46, %v1027_v46  ;;  %v607_v10 = vshrl.u32 %v606_v6, 7 }
 0x1b1   : > { %v1036_v55 = vsub.f32 %v507_v18, %v535_v50  ;;  %v1038_v56 = vsub.f32 %v508_v19, %v535_v50  ;;  %v1040_v57 = vsub.f32 %v509_v17, %v535_v50  ;;  %568 = vadd.xlane.f32.xlu0 %v567_v51  ;;  %v570_v58 = vadd.f32 %v555_v53, %v554_v52  ;;  %v604_v17 = vld [vmem:[%s1096_s3] sm:$0x7] }
 0x1b2   : > { %v571_v59 = vsel %vm511_vm1, %v556_v54, 0.0  ;;  %v608_v14 = vsub.s32 0, %v607_v10  ;;  %v612_v15 = vsub.s32 1, %v607_v10  ;;  %v616_v16 = vsub.s32 2, %v607_v10  ;;  %v633_v19 = vld [vmem:[%s1097_s4] sm:$0x7] }
 0x1b3   : > { %v572_v60 = vadd.f32 %v571_v59, %v570_v58  ;;  %v557_v61 = vmul.f32 %v1036_v55, %v1036_v55  ;;  %v558_v62 = vmul.f32 %v1038_v56, %v1038_v56  ;;  %v559_v63 = vmul.f32 %v1040_v57, %v1040_v57 }
 0x1b4   : > { %v609_v22 = vrot.slane %v604_v17, %v608_v14  ;;  %v613_v23 = vrot.slane %v604_v17, %v612_v15  ;;  %v617_v24 = vrot.slane %v604_v17, %v616_v16  ;;  %v638_v28 = vrot.slane %v633_v19, %v608_v14 }
 0x1b5   : > { %573 = vadd.xlane.f32.xlu1 %v572_v60  ;;  %v575_v0 = vadd.f32 %v558_v62, %v557_v61  ;;  %v576_v2 = vsel %vm511_vm1, %v559_v63, 0.0  ;;  %v642_v29 = vrot.slane %v633_v19, %v612_v15  ;;  %v646_v31 = vrot.slane %v633_v19, %v616_v16 }
 0x1b7   : > { %v577_v3 = vadd.f32 %v576_v2, %v575_v0 }
 0x1b9   : > { %578 = vadd.xlane.f32.xlu0 %v577_v3 }
 0x23a   : > { %v564_v4 = vpop.xlane.xlu1 %563 }
 0x23b   : > { %v580_v5 = vmul.f32 0.0033333334, %v564_v4 }
 0x23d   : > { %v584_v7 = vadd.f32 1e-05, %v580_v5 }
 0x23e   : > { %v569_v8 = vpop.xlane.xlu0 %568 }
 0x23f   : > { %823 = vrsqrt.f32 %v584_v7  ;;  %v581_v9 = vmul.f32 0.0033333334, %v569_v8 }
 0x241   : > { %v585_v11 = vadd.f32 1e-05, %v581_v9 }
 0x242   : > { %v574_v12 = vpop.xlane.xlu1 %573 }
 0x243   : > { %825 = vrsqrt.f32 %v585_v11  ;;  %v582_v13 = vmul.f32 0.0033333334, %v574_v12 }
 0x245   : > { %v586_v18 = vadd.f32 1e-05, %v582_v13 }
 0x246   : > { %v579_v20 = vpop.xlane.xlu0 %578 }
 0x247   : > { %827 = vrsqrt.f32 %v586_v18  ;;  %v583_v21 = vmul.f32 0.0033333334, %v579_v20 }
 0x249   : > { %v824_v25 = vpop.eup %823  ;;  %v587_v30 = vadd.f32 1e-05, %v583_v21 }
 0x24a   : > { %v592_v32 = vmul.f32 %v824_v25, %v998_v26  ;;  %v593_v36 = vmul.f32 %v824_v25, %v1000_v1  ;;  %v594_v37 = vmul.f32 %v824_v25, %v1002_v27 }
 0x24b   : > { %829 = vrsqrt.f32 %v587_v30 }
 0x24c   : > { %v621_v38 = vmul.f32 %v609_v22, %v592_v32  ;;  %v622_v39 = vmul.f32 %v613_v23, %v593_v36  ;;  %v623_v40 = vmul.f32 %v617_v24, %v594_v37 }
 0x24d   : > { %v826_v41 = vpop.eup %825 }
 0x24e   : > { %v650_v42 = vadd.f32 %v638_v28, %v621_v38  ;;  %v651_v43 = vadd.f32 %v642_v29, %v622_v39  ;;  %v652_v26 = vadd.f32 %v646_v31, %v623_v40  ;;  %v595_v1 = vmul.f32 %v826_v41, %v1010_v33 }
 0x24f   : > { %v596_v27 = vmul.f32 %v826_v41, %v1012_v34  ;;  %v597_v47 = vmul.f32 %v826_v41, %v1014_v35 }
 0x250   : > { %662 = vst [vmem:[%s1063_s7] sm:$0xff] %v650_v42  ;;  %663 = vst [vmem:[%s1063_s7 + $0x8] sm:$0xff] %v651_v43  ;;  %v624_v48 = vmul.f32 %v609_v22, %v595_v1 }
 0x251   : > { %664 = vst.msk [vmem:[%s1063_s7 + $0x10] sm:$0xff] %vm511_vm1, %v652_v26  ;;  %v828_v49 = vpop.eup %827  ;;  %v625_v50 = vmul.f32 %v613_v23, %v596_v27  ;;  %v626_v51 = vmul.f32 %v617_v24, %v597_v47 }
 0x252   : > { %v653_v52 = vadd.f32 %v638_v28, %v624_v48  ;;  %v598_v53 = vmul.f32 %v828_v49, %v1023_v44  ;;  %v599_v33 = vmul.f32 %v828_v49, %v1025_v45  ;;  %v600_v54 = vmul.f32 %v828_v49, %v1027_v46 }
 0x253   : > { %v654_v34 = vadd.f32 %v642_v29, %v625_v50  ;;  %v655_v35 = vadd.f32 %v646_v31, %v626_v51 }
 0x254   : > { %665 = vst [vmem:[%s1063_s7 + $0x18] sm:$0xff] %v653_v52  ;;  %v627_v58 = vmul.f32 %v609_v22, %v598_v53  ;;  %v628_v59 = vmul.f32 %v613_v23, %v599_v33  ;;  %v629_v60 = vmul.f32 %v617_v24, %v600_v54 }
 0x255   : > { %v830_v61 = vpop.eup %829  ;;  %666 = vst [vmem:[%s1063_s7 + $0x20] sm:$0xff] %v654_v34  ;;  %667 = vst.msk [vmem:[%s1063_s7 + $0x28] sm:$0xff] %vm511_vm1, %v655_v35 }
 0x256   : > { %v656_v62 = vadd.f32 %v638_v28, %v627_v58  ;;  %v657_v44 = vadd.f32 %v642_v29, %v628_v59  ;;  %v658_v45 = vadd.f32 %v646_v31, %v629_v60  ;;  %v601_v46 = vmul.f32 %v830_v61, %v1036_v55 }
 0x257   : > { %v602_v63 = vmul.f32 %v830_v61, %v1038_v56  ;;  %v603_v0 = vmul.f32 %v830_v61, %v1040_v57 }
 0x258   : > { %668 = vst [vmem:[%s1063_s7 + $0x30] sm:$0xff] %v656_v62  ;;  %669 = vst [vmem:[%s1063_s7 + $0x38] sm:$0xff] %v657_v44  ;;  %v630_v2 = vmul.f32 %v609_v22, %v601_v46 }
 0x259   : > { %670 = vst.msk [vmem:[%s1063_s7 + $0x40] sm:$0xff] %vm511_vm1, %v658_v45  ;;  %v631_v3 = vmul.f32 %v613_v23, %v602_v63  ;;  %v632_v4 = vmul.f32 %v617_v24, %v603_v0 }
 0x25a   : > { %v659_v5 = vadd.f32 %v638_v28, %v630_v2 }
 0x25b   : > { %v660_v6 = vadd.f32 %v642_v29, %v631_v3  ;;  %v661_v7 = vadd.f32 %v646_v31, %v632_v4 }
 0x25c   : > { %671 = vst [vmem:[%s1063_s7 + $0x48] sm:$0xff] %v659_v5 }
 0x25d   : > { %672 = vst [vmem:[%s1063_s7 + $0x50] sm:$0xff] %v660_v6  ;;  %673 = vst.msk [vmem:[%s1063_s7 + $0x58] sm:$0xff] %vm511_vm1, %v661_v7 }
 0x25e PF: > { %s15_s18 = sadd.s32 1, %s837_s18  }
 0x25f   : > { %p12_p4 = scmp.ge.s32.totalorder %s15_s18, 4  }
 0x261   :  { %14 = sbr.rel (!%p12_p4) target bundleno = 1 (0x1), region = 70 }

// kernel: _lambda_.5
= control target key start
LH: loop header
LB: loop body
LE: loop exit
PB: predicated region body
PF: predicated region fallthrough
CT: control target
= control target key end

     0   :  { %v1850_v43 = vmov 1983009808   ;;  %v336_v45 = vlaneseq  ;;  %s2863_s0 = inlined_call_operand.vmem [shape: f32[2,2400], index: 0, kind: input, shape index: {}]   ;;  %s2864_s1 = inlined_call_operand.vmem [shape: f32[2400,39], index: 1, kind: input, shape index: {}]   ;;  %s2865_s2 = inlined_call_operand.vmem [shape: f32[1,39], index: 2, kind: input, shape index: {}]   ;;  %s2866_s3 = inlined_call_operand.hbm [shape: f32[2,39], index: 3, kind: output, shape index: {}]  }
   0x1   :  { %v36_v0 = vld [vmem:[%s2864_s1 + $0x80] sm:$0xff]  ;;  %v37_v1 = vld [vmem:[%s2864_s1 + $0x88] sm:$0xff]  ;;  %v38_v11 = vld [vmem:[%s2864_s1 + $0x90] sm:$0xff]  ;;  %v334_v44 = vunpack.c.l.s4 %v1850_v43 }
   0x2   :  { %v20_v2 = vld [vmem:[%s2864_s1] sm:$0xff]  ;;  %v1510_v3 = vpack.c.bf16 %v37_v1, %v36_v0  ;;  %v21_v4 = vld [vmem:[%s2864_s1 + $0x8] sm:$0xff]  ;;  %v39_v13 = vld [vmem:[%s2864_s1 + $0x98] sm:$0xff]  ;;  %v337_v60 = vshrl.u32 %v336_v45, 7 }
   0x3   :  { %v68_v5 = vld [vmem:[%s2864_s1 + $0x180] sm:$0xff]  ;;  %v69_v6 = vld [vmem:[%s2864_s1 + $0x188] sm:$0xff]  ;;  %v1512_v7 = vpack.c.bf16 %v21_v4, %v20_v2  ;;  %v22_v14 = vld [vmem:[%s2864_s1 + $0x10] sm:$0xff]  ;;  %v1514_v16 = vpack.c.bf16 %v39_v13, %v38_v11  ;;  %v335_v59 = vunpack.c.0.s8 %v334_v44 }
   0x4   :  { %v1542_v8 = vpack.c.bf16 %v69_v6, %v68_v5  ;;  %v52_v9 = vld [vmem:[%s2864_s1 + $0x100] sm:$0xff]  ;;  %v53_v10 = vld [vmem:[%s2864_s1 + $0x108] sm:$0xff]  ;;  %1511 = vmatprep.subr.bf16.mxu0 %v1510_v3  ;;  %v23_v15 = vld [vmem:[%s2864_s1 + $0x18] sm:$0xff] }
   0x5   :  { %v1544_v12 = vpack.c.bf16 %v53_v10, %v52_v9  ;;  %1513 = vmatpush3.bf16.msra.mxu0 %v1512_v7  ;;  %v1516_v17 = vpack.c.bf16 %v23_v15, %v22_v14  ;;  %v70_v18 = vld [vmem:[%s2864_s1 + $0x190] sm:$0xff]  ;;  %v71_v19 = vld [vmem:[%s2864_s1 + $0x198] sm:$0xff]  ;;  %v40_v23 = vld [vmem:[%s2864_s1 + $0xa0] sm:$0xff]  ;;  %v2019_v10 = vsub.s32 %v335_v59, %v337_v60 }
   0x6   :  { %1543 = vmatprep.subr.bf16.mxu1 %v1542_v8  ;;  %v54_v20 = vld [vmem:[%s2864_s1 + $0x110] sm:$0xff]  ;;  %v1546_v21 = vpack.c.bf16 %v71_v19, %v70_v18  ;;  %v55_v22 = vld [vmem:[%s2864_s1 + $0x118] sm:$0xff]  ;;  %v41_v24 = vld [vmem:[%s2864_s1 + $0xa8] sm:$0xff]  ;;  %1515 = vmatprep.subr.bf16.mxu0 %v1514_v16 }
   0x7   :  { %1545 = vmatpush3.bf16.msra.mxu1 %v1544_v12  ;;  %v1548_v25 = vpack.c.bf16 %v55_v22, %v54_v20  ;;  %v1518_v26 = vpack.c.bf16 %v41_v24, %v40_v23  ;;  %v24_v27 = vld [vmem:[%s2864_s1 + $0x20] sm:$0xff]  ;;  %v25_v28 = vld [vmem:[%s2864_s1 + $0x28] sm:$0xff]  ;;  %v42_v35 = vld [vmem:[%s2864_s1 + $0xb0] sm:$0xff] }
   0x8   :  { %v72_v29 = vld [vmem:[%s2864_s1 + $0x1a0] sm:$0xff]  ;;  %1547 = vmatprep.subr.bf16.mxu1 %v1546_v21  ;;  %v73_v30 = vld [vmem:[%s2864_s1 + $0x1a8] sm:$0xff]  ;;  %v1520_v33 = vpack.c.bf16 %v25_v28, %v24_v27  ;;  %v43_v36 = vld [vmem:[%s2864_s1 + $0xb8] sm:$0xff] }
   0x9   :  { %v56_v31 = vld [vmem:[%s2864_s1 + $0x120] sm:$0xff]  ;;  %v57_v32 = vld [vmem:[%s2864_s1 + $0x128] sm:$0xff]  ;;  %1517 = vmatpush3.bf16.msra.mxu0 %v1516_v17  ;;  %v1550_v34 = vpack.c.bf16 %v73_v30, %v72_v29  ;;  %v26_v37 = vld [vmem:[%s2864_s1 + $0x30] sm:$0xff]  ;;  %v1522_v39 = vpack.c.bf16 %v43_v36, %v42_v35 }
   0xa   :  { %1519 = vmatprep.subr.bf16.mxu0 %v1518_v26  ;;  %v1552_v38 = vpack.c.bf16 %v57_v32, %v56_v31  ;;  %v27_v40 = vld [vmem:[%s2864_s1 + $0x38] sm:$0xff]  ;;  %v74_v41 = vld [vmem:[%s2864_s1 + $0x1b0] sm:$0xff]  ;;  %v44_v49 = vld [vmem:[%s2864_s1 + $0xc0] sm:$0xff] }
   0xb   :  { %1549 = vmatpush3.bf16.msra.mxu1 %v1548_v25  ;;  %v75_v42 = vld [vmem:[%s2864_s1 + $0x1b8] sm:$0xff]  ;;  %v58_v47 = vld [vmem:[%s2864_s1 + $0x130] sm:$0xff]  ;;  %v45_v50 = vld [vmem:[%s2864_s1 + $0xc8] sm:$0xff]  ;;  %v1524_v51 = vpack.c.bf16 %v27_v40, %v26_v37 }
   0xc   :  { %1551 = vmatprep.subr.bf16.mxu1 %v1550_v34  ;;  %v1554_v46 = vpack.c.bf16 %v75_v42, %v74_v41  ;;  %v59_v48 = vld [vmem:[%s2864_s1 + $0x138] sm:$0xff]  ;;  %v76_v52 = vld [vmem:[%s2864_s1 + $0x1c0] sm:$0xff]  ;;  %v77_v53 = vld [vmem:[%s2864_s1 + $0x1c8] sm:$0xff]  ;;  %v1526_v55 = vpack.c.bf16 %v45_v50, %v44_v49 }
   0xd   :  { %1521 = vmatpush3.bf16.msra.mxu0 %v1520_v33  ;;  %v1556_v54 = vpack.c.bf16 %v59_v48, %v58_v47  ;;  %v28_v56 = vld [vmem:[%s2864_s1 + $0x40] sm:$0xff]  ;;  %v29_v57 = vld [vmem:[%s2864_s1 + $0x48] sm:$0xff]  ;;  %v1558_v61 = vpack.c.bf16 %v77_v53, %v76_v52  ;;  %v46_v63 = vld [vmem:[%s2864_s1 + $0xd0] sm:$0xff] }
   0xe   :  { %1523 = vmatprep.subr.bf16.mxu0 %v1522_v39  ;;  %v60_v58 = vld [vmem:[%s2864_s1 + $0x140] sm:$0xff]  ;;  %v61_v62 = vld [vmem:[%s2864_s1 + $0x148] sm:$0xff]  ;;  %v47_v0 = vld [vmem:[%s2864_s1 + $0xd8] sm:$0xff]  ;;  %v1528_v3 = vpack.c.bf16 %v29_v57, %v28_v56 }
   0xf   :  { %1553 = vmatpush3.bf16.msra.mxu1 %v1552_v38  ;;  %v78_v1 = vld [vmem:[%s2864_s1 + $0x1d0] sm:$0xff]  ;;  %v79_v2 = vld [vmem:[%s2864_s1 + $0x1d8] sm:$0xff]  ;;  %v1560_v5 = vpack.c.bf16 %v61_v62, %v60_v58  ;;  %v1530_v6 = vpack.c.bf16 %v47_v0, %v46_v63  ;;  %v48_v12 = vld [vmem:[%s2864_s1 + $0xe0] sm:$0xff] }
  0x10   :  { %1555 = vmatprep.subr.bf16.mxu1 %v1554_v46  ;;  %v30_v4 = vld [vmem:[%s2864_s1 + $0x50] sm:$0xff]  ;;  %v31_v7 = vld [vmem:[%s2864_s1 + $0x58] sm:$0xff]  ;;  %v1562_v11 = vpack.c.bf16 %v79_v2, %v78_v1  ;;  %v49_v13 = vld [vmem:[%s2864_s1 + $0xe8] sm:$0xff] }
  0x11   :  { %1525 = vmatpush3.bf16.msra.mxu0 %v1524_v51  ;;  %v62_v8 = vld [vmem:[%s2864_s1 + $0x150] sm:$0xff]  ;;  %v63_v9 = vld [vmem:[%s2864_s1 + $0x158] sm:$0xff]  ;;  %v80_v14 = vld [vmem:[%s2864_s1 + $0x1e0] sm:$0xff]  ;;  %v1532_v16 = vpack.c.bf16 %v31_v7, %v30_v4  ;;  %v1534_v19 = vpack.c.bf16 %v49_v13, %v48_v12 }
  0x12   :  { %1527 = vmatprep.subr.bf16.mxu0 %v1526_v55  ;;  %v81_v15 = vld [vmem:[%s2864_s1 + $0x1e8] sm:$0xff]  ;;  %v1564_v17 = vpack.c.bf16 %v63_v9, %v62_v8  ;;  %v15_v18 = vld [vmem:[%s2863_s0] sm:$0xff]  ;;  %v50_v27 = vld [vmem:[%s2864_s1 + $0xf0] sm:$0xff] }
  0x13   :  { %1557 = vmatpush3.bf16.msra.mxu1 %v1556_v54  ;;  %v32_v20 = vld [vmem:[%s2864_s1 + $0x60] sm:$0xff]  ;;  %v33_v21 = vld [vmem:[%s2864_s1 + $0x68] sm:$0xff]  ;;  %v339_v23 = vrot.slane %v15_v18, %v2019_v10  ;;  %v332_v24 = vcombine.high %v15_v18, %v15_v18  ;;  %v1566_v25 = vpack.c.bf16 %v81_v15, %v80_v14  ;;  %v51_v28 = vld [vmem:[%s2864_s1 + $0xf8] sm:$0xff] }
  0x14   :  { %1559 = vmatprep.subr.bf16.mxu1 %v1558_v61  ;;  %v64_v22 = vld [vmem:[%s2864_s1 + $0x160] sm:$0xff]  ;;  %v65_v26 = vld [vmem:[%s2864_s1 + $0x168] sm:$0xff]  ;;  %v82_v29 = vld [vmem:[%s2864_s1 + $0x1f0] sm:$0xff]  ;;  %v1536_v33 = vpack.c.bf16 %v33_v21, %v32_v20  ;;  %v1538_v35 = vpack.c.bf16 %v51_v28, %v50_v27 }
  0x15   :  { %1529 = vmatpush3.bf16.msra.mxu0 %v1528_v3  ;;  %v83_v30 = vld [vmem:[%s2864_s1 + $0x1f8] sm:$0xff]  ;;  %v347_v31 = vcombine.high %v339_v23, %v339_v23  ;;  %v346_v32 = vrot.slane %v332_v24, %v2019_v10  ;;  %v1568_v34 = vpack.c.bf16 %v65_v26, %v64_v22  ;;  %v34_v36 = vld [vmem:[%s2864_s1 + $0x70] sm:$0xff]  ;;  %v100_v42 = vld [vmem:[%s2864_s1 + $0x280] sm:$0xff] }
  0x16   :  { %1531 = vmatprep.subr.bf16.mxu0 %v1530_v6  ;;  %v35_v37 = vld [vmem:[%s2864_s1 + $0x78] sm:$0xff]  ;;  %v66_v38 = vld [vmem:[%s2864_s1 + $0x170] sm:$0xff]  ;;  %v1570_v40 = vpack.c.bf16 %v83_v30, %v82_v29  ;;  %v101_v43 = vld [vmem:[%s2864_s1 + $0x288] sm:$0xff] }
  0x17   :  { %1561 = vmatpush3.bf16.msra.mxu1 %v1560_v5  ;;  %v348_v39 = vcombine.high %v346_v32, %v346_v32  ;;  %501 = vmatprep.mubr.f32.mxu0 %v347_v31  ;;  %v67_v41 = vld [vmem:[%s2864_s1 + $0x178] sm:$0xff]  ;;  %v132_v44 = vld [vmem:[%s2864_s1 + $0x380] sm:$0xff]  ;;  %v133_v45 = vld [vmem:[%s2864_s1 + $0x388] sm:$0xff]  ;;  %v1540_v46 = vpack.c.bf16 %v35_v37, %v34_v36  ;;  %v1574_v48 = vpack.c.bf16 %v101_v43, %v100_v42 }
  0x18   :  { %1563 = vmatprep.subr.bf16.mxu1 %v1562_v11  ;;  %v1572_v47 = vpack.c.bf16 %v67_v41, %v66_v38  ;;  %v84_v49 = vld [vmem:[%s2864_s1 + $0x200] sm:$0xff]  ;;  %v85_v50 = vld [vmem:[%s2864_s1 + $0x208] sm:$0xff]  ;;  %v1606_v52 = vpack.c.bf16 %v133_v45, %v132_v44  ;;  %v102_v54 = vld [vmem:[%s2864_s1 + $0x290] sm:$0xff] }
  0x19   :  { %1533 = vmatpush3.bf16.msra.mxu0 %v1532_v16  ;;  %571 = vmatprep.mubr.f32.mxu1 %v348_v39  ;;  %v116_v51 = vld [vmem:[%s2864_s1 + $0x300] sm:$0xff]  ;;  %v117_v53 = vld [vmem:[%s2864_s1 + $0x308] sm:$0xff]  ;;  %v103_v55 = vld [vmem:[%s2864_s1 + $0x298] sm:$0xff]  ;;  %v1576_v58 = vpack.c.bf16 %v85_v50, %v84_v49 }
  0x1a   :  { %1535 = vmatprep.subr.bf16.mxu0 %v1534_v19  ;;  %v134_v56 = vld [vmem:[%s2864_s1 + $0x390] sm:$0xff]  ;;  %v135_v57 = vld [vmem:[%s2864_s1 + $0x398] sm:$0xff]  ;;  %v1608_v59 = vpack.c.bf16 %v117_v53, %v116_v51  ;;  %v1578_v60 = vpack.c.bf16 %v103_v55, %v102_v54  ;;  %v104_v2 = vld [vmem:[%s2864_s1 + $0x2a0] sm:$0xff] }
  0x1b   :  { %1565 = vmatpush3.bf16.msra.mxu1 %v1564_v17  ;;  %v86_v61 = vld [vmem:[%s2864_s1 + $0x210] sm:$0xff]  ;;  %v87_v62 = vld [vmem:[%s2864_s1 + $0x218] sm:$0xff]  ;;  %v1610_v0 = vpack.c.bf16 %v135_v57, %v134_v56  ;;  %v105_v3 = vld [vmem:[%s2864_s1 + $0x2a8] sm:$0xff] }
  0x1c   :  { %1567 = vmatprep.subr.bf16.mxu1 %v1566_v25  ;;  %v118_v63 = vld [vmem:[%s2864_s1 + $0x310] sm:$0xff]  ;;  %v119_v1 = vld [vmem:[%s2864_s1 + $0x318] sm:$0xff]  ;;  %v136_v4 = vld [vmem:[%s2864_s1 + $0x3a0] sm:$0xff]  ;;  %v1580_v6 = vpack.c.bf16 %v87_v62, %v86_v61  ;;  %v1582_v8 = vpack.c.bf16 %v105_v3, %v104_v2 }
  0x1d   :  { %1537 = vmatpush3.bf16.msra.mxu0 %v1536_v33  ;;  %v137_v5 = vld [vmem:[%s2864_s1 + $0x3a8] sm:$0xff]  ;;  %v1612_v7 = vpack.c.bf16 %v119_v1, %v118_v63  ;;  %v88_v9 = vld [vmem:[%s2864_s1 + $0x220] sm:$0xff]  ;;  %v106_v15 = vld [vmem:[%s2864_s1 + $0x2b0] sm:$0xff] }
  0x1e   :  { %1539 = vmatprep.subr.bf16.mxu0 %v1538_v35  ;;  %v89_v11 = vld [vmem:[%s2864_s1 + $0x228] sm:$0xff]  ;;  %v120_v12 = vld [vmem:[%s2864_s1 + $0x320] sm:$0xff]  ;;  %v1614_v13 = vpack.c.bf16 %v137_v5, %v136_v4  ;;  %v107_v16 = vld [vmem:[%s2864_s1 + $0x2b8] sm:$0xff] }
  0x1f   :  { %1569 = vmatpush3.bf16.msra.mxu1 %v1568_v34  ;;  %v121_v14 = vld [vmem:[%s2864_s1 + $0x328] sm:$0xff]  ;;  %v138_v17 = vld [vmem:[%s2864_s1 + $0x3b0] sm:$0xff]  ;;  %v139_v18 = vld [vmem:[%s2864_s1 + $0x3b8] sm:$0xff]  ;;  %v1584_v19 = vpack.c.bf16 %v89_v11, %v88_v9  ;;  %v1586_v22 = vpack.c.bf16 %v107_v16, %v106_v15 }
  0x20   :  { %1571 = vmatprep.subr.bf16.mxu1 %v1570_v40  ;;  %v90_v20 = vld [vmem:[%s2864_s1 + $0x230] sm:$0xff]  ;;  %v1616_v21 = vpack.c.bf16 %v121_v14, %v120_v12  ;;  %v123_v25 = vld [vmem:[%s2864_s1 + $0x338] sm:$0xff]  ;;  %v1618_v26 = vpack.c.bf16 %v139_v18, %v138_v17  ;;  %v108_v27 = vld [vmem:[%s2864_s1 + $0x2c0] sm:$0xff] }
  0x21   :  { %1541 = vmatpush3.bf16.msra.mxu0 %v1540_v46  ;;  %v122_v24 = vld [vmem:[%s2864_s1 + $0x330] sm:$0xff]  ;;  %v109_v28 = vld [vmem:[%s2864_s1 + $0x2c8] sm:$0xff]  ;;  %v140_v30 = vld [vmem:[%s2864_s1 + $0x3c0] sm:$0xff] }
  0x22   :  { %1575 = vmatprep.subr.bf16.mxu0 %v1574_v48  ;;  %v16_v29 = vld [vmem:[%s2863_s0 + $0x8] sm:$0xff]  ;;  %v1620_v35 = vpack.c.bf16 %v123_v25, %v122_v24  ;;  %v1590_v36 = vpack.c.bf16 %v109_v28, %v108_v27  ;;  %v92_v37 = vld [vmem:[%s2864_s1 + $0x240] sm:$0xff]  ;;  %v110_v44 = vld [vmem:[%s2864_s1 + $0x2d0] sm:$0xff] }
  0x23   :  { %1573 = vmatpush3.bf16.msra.mxu1 %v1572_v47  ;;  %v141_v31 = vld [vmem:[%s2864_s1 + $0x3c8] sm:$0xff]  ;;  %v349_v33 = vcombine.high %v16_v29, %v16_v29  ;;  %v124_v39 = vld [vmem:[%s2864_s1 + $0x340] sm:$0xff]  ;;  %v111_v45 = vld [vmem:[%s2864_s1 + $0x2d8] sm:$0xff] }
  0x24   :  { %1607 = vmatprep.subr.bf16.mxu1 %v1606_v52  ;;  %502 = vmatmul.mubr.f32.vlgmr.msra.gmra.mrb[0].mxu0 %v339_v23  ;;  %v91_v23 = vld [vmem:[%s2864_s1 + $0x238] sm:$0xff]  ;;  %v93_v38 = vld [vmem:[%s2864_s1 + $0x248] sm:$0xff]  ;;  %v1622_v42 = vpack.c.bf16 %v141_v31, %v140_v30  ;;  %v142_v46 = vld [vmem:[%s2864_s1 + $0x3d0] sm:$0xff]  ;;  %v1594_v51 = vpack.c.bf16 %v111_v45, %v110_v44 }
  0x25   :  { %1577 = vmatpush3.bf16.msra.mxu0 %v1576_v58  ;;  %v1588_v34 = vpack.c.bf16 %v91_v23, %v90_v20  ;;  %v2200_v41 = vrot.slane %v349_v33, %v2019_v10  ;;  %v125_v43 = vld [vmem:[%s2864_s1 + $0x348] sm:$0xff]  ;;  %v143_v47 = vld [vmem:[%s2864_s1 + $0x3d8] sm:$0xff]  ;;  %v1592_v49 = vpack.c.bf16 %v93_v38, %v92_v37  ;;  %v94_v52 = vld [vmem:[%s2864_s1 + $0x250] sm:$0xff] }
  0x26   :  { %572 = vmatmul.mubr.f32.vlgmr.msra.gmra.mrb[0].mxu1 %v346_v32  ;;  %1579 = vmatprep.subr.bf16.mxu0 %v1578_v60  ;;  %v2186_v32 = vrot.slane %v16_v29, %v2019_v10  ;;  %v1624_v50 = vpack.c.bf16 %v125_v43, %v124_v39  ;;  %v95_v53 = vld [vmem:[%s2864_s1 + $0x258] sm:$0xff]  ;;  %v126_v54 = vld [vmem:[%s2864_s1 + $0x350] sm:$0xff]  ;;  %v1626_v55 = vpack.c.bf16 %v143_v47, %v142_v46  ;;  %v112_v57 = vld [vmem:[%s2864_s1 + $0x2e0] sm:$0xff] }
  0x27   :  { %1609 = vmatpush3.bf16.msra.mxu1 %v1608_v59  ;;  %v365_v48 = vcombine.high %v2200_v41, %v2200_v41  ;;  %v127_v56 = vld [vmem:[%s2864_s1 + $0x358] sm:$0xff]  ;;  %v113_v58 = vld [vmem:[%s2864_s1 + $0x2e8] sm:$0xff]  ;;  %v144_v59 = vld [vmem:[%s2864_s1 + $0x3e0] sm:$0xff]  ;;  %v1596_v61 = vpack.c.bf16 %v95_v53, %v94_v52 }
  0x28   :  { %1611 = vmatprep.subr.bf16.mxu1 %v1610_v0  ;;  %v364_v40 = vcombine.high %v2186_v32, %v2186_v32  ;;  %v145_v60 = vld [vmem:[%s2864_s1 + $0x3e8] sm:$0xff]  ;;  %v1628_v62 = vpack.c.bf16 %v127_v56, %v126_v54  ;;  %v1598_v63 = vpack.c.bf16 %v113_v58, %v112_v57  ;;  %v96_v0 = vld [vmem:[%s2864_s1 + $0x260] sm:$0xff]  ;;  %v114_v5 = vld [vmem:[%s2864_s1 + $0x2f0] sm:$0xff] }
  0x29   :  { %1581 = vmatpush3.bf16.msra.mxu0 %v1580_v6  ;;  %711 = vmatprep.mubr.f32.mxu1 %v365_v48  ;;  %v97_v1 = vld [vmem:[%s2864_s1 + $0x268] sm:$0xff]  ;;  %v128_v2 = vld [vmem:[%s2864_s1 + $0x360] sm:$0xff]  ;;  %v1630_v3 = vpack.c.bf16 %v145_v60, %v144_v59  ;;  %v115_v6 = vld [vmem:[%s2864_s1 + $0x2f8] sm:$0xff] }
  0x2a   :  { %1583 = vmatprep.subr.bf16.mxu0 %v1582_v8  ;;  %641 = vmatprep.mubr.f32.mxu0 %v364_v40  ;;  %v129_v4 = vld [vmem:[%s2864_s1 + $0x368] sm:$0xff]  ;;  %v147_v8 = vld [vmem:[%s2864_s1 + $0x3f8] sm:$0xff]  ;;  %v1600_v9 = vpack.c.bf16 %v97_v1, %v96_v0  ;;  %v1602_v12 = vpack.c.bf16 %v115_v6, %v114_v5  ;;  %v130_v15 = vld [vmem:[%s2864_s1 + $0x370] sm:$0xff] }
  0x2b   :  { %1613 = vmatpush3.bf16.msra.mxu1 %v1612_v7  ;;  %v146_v7 = vld [vmem:[%s2864_s1 + $0x3f0] sm:$0xff]  ;;  %v1632_v11 = vpack.c.bf16 %v129_v4, %v128_v2  ;;  %v99_v14 = vld [vmem:[%s2864_s1 + $0x278] sm:$0xff]  ;;  %v164_v18 = vld [vmem:[%s2864_s1 + $0x480] sm:$0xff] }
  0x2c   :  { %1615 = vmatprep.subr.bf16.mxu1 %v1614_v13  ;;  %v98_v13 = vld [vmem:[%s2864_s1 + $0x270] sm:$0xff]  ;;  %v1634_v16 = vpack.c.bf16 %v147_v8, %v146_v7  ;;  %v131_v17 = vld [vmem:[%s2864_s1 + $0x378] sm:$0xff]  ;;  %v196_v20 = vld [vmem:[%s2864_s1 + $0x580] sm:$0xff] }
  0x2d   :  { %1585 = vmatpush3.bf16.msra.mxu0 %v1584_v19  ;;  %v165_v19 = vld [vmem:[%s2864_s1 + $0x488] sm:$0xff]  ;;  %v148_v23 = vld [vmem:[%s2864_s1 + $0x400] sm:$0xff]  ;;  %v1636_v24 = vpack.c.bf16 %v131_v17, %v130_v15  ;;  %v166_v30 = vld [vmem:[%s2864_s1 + $0x490] sm:$0xff] }
  0x2e   :  { %1587 = vmatprep.subr.bf16.mxu0 %v1586_v22  ;;  %v1604_v22 = vpack.c.bf16 %v99_v14, %v98_v13  ;;  %v1638_v25 = vpack.c.bf16 %v165_v19, %v164_v18  ;;  %v180_v27 = vld [vmem:[%s2864_s1 + $0x500] sm:$0xff]  ;;  %v181_v28 = vld [vmem:[%s2864_s1 + $0x508] sm:$0xff]  ;;  %v167_v31 = vld [vmem:[%s2864_s1 + $0x498] sm:$0xff] }
  0x2f   :  { %1617 = vmatpush3.bf16.msra.mxu1 %v1616_v21  ;;  %v197_v21 = vld [vmem:[%s2864_s1 + $0x588] sm:$0xff]  ;;  %v198_v33 = vld [vmem:[%s2864_s1 + $0x590] sm:$0xff]  ;;  %v1642_v38 = vpack.c.bf16 %v167_v31, %v166_v30  ;;  %v151_v40 = vld [vmem:[%s2864_s1 + $0x418] sm:$0xff] }
  0x30   :  { %1619 = vmatprep.subr.bf16.mxu1 %v1618_v26  ;;  %v149_v26 = vld [vmem:[%s2864_s1 + $0x408] sm:$0xff]  ;;  %v1670_v29 = vpack.c.bf16 %v197_v21, %v196_v20  ;;  %v17_v37 = vld [vmem:[%s2863_s0 + $0x10] sm:$0xff]  ;;  %v183_v46 = vld [vmem:[%s2864_s1 + $0x518] sm:$0xff] }
  0x31   :  { %1589 = vmatpush3.bf16.msra.mxu0 %v1588_v34  ;;  %v199_v34 = vld [vmem:[%s2864_s1 + $0x598] sm:$0xff]  ;;  %v150_v39 = vld [vmem:[%s2864_s1 + $0x410] sm:$0xff]  ;;  %v2328_v43 = vrot.slane %v17_v37, %v2019_v10  ;;  %v366_v44 = vcombine.high %v17_v37, %v17_v37  ;;  %v168_v47 = vld [vmem:[%s2864_s1 + $0x4a0] sm:$0xff] }
  0x32   :  { %1591 = vmatprep.subr.bf16.mxu0 %v1590_v36  ;;  %v1672_v36 = vpack.c.bf16 %v181_v28, %v180_v27  ;;  %v1674_v45 = vpack.c.bf16 %v199_v34, %v198_v33  ;;  %v169_v48 = vld [vmem:[%s2864_s1 + $0x4a8] sm:$0xff]  ;;  %v1644_v53 = vpack.c.bf16 %v151_v40, %v150_v39  ;;  %v184_v57 = vld [vmem:[%s2864_s1 + $0x520] sm:$0xff]  ;;  %v170_v60 = vld [vmem:[%s2864_s1 + $0x4b0] sm:$0xff] }
  0x33   :  { %1621 = vmatpush3.bf16.msra.mxu1 %v1620_v35  ;;  %v1640_v35 = vpack.c.bf16 %v149_v26, %v148_v23  ;;  %v2349_v52 = vrot.slane %v366_v44, %v2019_v10  ;;  %v1646_v54 = vpack.c.bf16 %v169_v48, %v168_v47  ;;  %v153_v56 = vld [vmem:[%s2864_s1 + $0x428] sm:$0xff]  ;;  %v155_v4 = vld [vmem:[%s2864_s1 + $0x438] sm:$0xff]  ;;  %v186_v5 = vld [vmem:[%s2864_s1 + $0x530] sm:$0xff] }
  0x34   :  { %1623 = vmatprep.subr.bf16.mxu1 %v1622_v42  ;;  %v182_v42 = vld [vmem:[%s2864_s1 + $0x510] sm:$0xff]  ;;  %v185_v59 = vld [vmem:[%s2864_s1 + $0x528] sm:$0xff]  ;;  %v187_v7 = vld [vmem:[%s2864_s1 + $0x538] sm:$0xff] }
  0x35   :  { %1593 = vmatpush3.bf16.msra.mxu0 %v1592_v49  ;;  %v200_v49 = vld [vmem:[%s2864_s1 + $0x5a0] sm:$0xff]  ;;  %v1680_v1 = vpack.c.bf16 %v185_v59, %v184_v57  ;;  %v1684_v14 = vpack.c.bf16 %v187_v7, %v186_v5  ;;  %v157_v17 = vld [vmem:[%s2864_s1 + $0x448] sm:$0xff]  ;;  %v174_v21 = vld [vmem:[%s2864_s1 + $0x4d0] sm:$0xff] }
  0x36   :  { %1595 = vmatprep.subr.bf16.mxu0 %v1594_v51  ;;  %v381_v51 = vcombine.high %v2328_v43, %v2328_v43  ;;  %v172_v8 = vld [vmem:[%s2864_s1 + $0x4c0] sm:$0xff]  ;;  %v189_v20 = vld [vmem:[%s2864_s1 + $0x548] sm:$0xff]  ;;  %v206_v23 = vld [vmem:[%s2864_s1 + $0x5d0] sm:$0xff] }
  0x37   :  { %1625 = vmatpush3.bf16.msra.mxu1 %v1624_v50  ;;  %v201_v50 = vld [vmem:[%s2864_s1 + $0x5a8] sm:$0xff]  ;;  %v188_v18 = vld [vmem:[%s2864_s1 + $0x540] sm:$0xff]  ;;  %v158_v28 = vld [vmem:[%s2864_s1 + $0x450] sm:$0xff] }
  0x38   :  { %1627 = vmatprep.subr.bf16.mxu1 %v1626_v55  ;;  %v152_v55 = vld [vmem:[%s2864_s1 + $0x420] sm:$0xff]  ;;  %v1678_v58 = vpack.c.bf16 %v201_v50, %v200_v49  ;;  %v1688_v26 = vpack.c.bf16 %v189_v20, %v188_v18  ;;  %v190_v30 = vld [vmem:[%s2864_s1 + $0x550] sm:$0xff]  ;;  %v191_v33 = vld [vmem:[%s2864_s1 + $0x558] sm:$0xff] }
  0x39   :  { %1597 = vmatpush3.bf16.msra.mxu0 %v1596_v61  ;;  %v171_v61 = vld [vmem:[%s2864_s1 + $0x4b8] sm:$0xff]  ;;  %v1648_v0 = vpack.c.bf16 %v153_v56, %v152_v55  ;;  %v176_v34 = vld [vmem:[%s2864_s1 + $0x4e0] sm:$0xff]  ;;  %v209_v37 = vld [vmem:[%s2864_s1 + $0x5e8] sm:$0xff]  ;;  %v1692_v39 = vpack.c.bf16 %v191_v33, %v190_v30 }
  0x3a   :  { %1599 = vmatprep.subr.bf16.mxu0 %v1598_v63  ;;  %v203_v63 = vld [vmem:[%s2864_s1 + $0x5b8] sm:$0xff]  ;;  %v1650_v2 = vpack.c.bf16 %v171_v61, %v170_v60  ;;  %v161_v44 = vld [vmem:[%s2864_s1 + $0x468] sm:$0xff]  ;;  %v178_v48 = vld [vmem:[%s2864_s1 + $0x4f0] sm:$0xff] }
  0x3b   :  { %1629 = vmatpush3.bf16.msra.mxu1 %v1628_v62  ;;  %v202_v62 = vld [vmem:[%s2864_s1 + $0x5b0] sm:$0xff]  ;;  %v193_v47 = vld [vmem:[%s2864_s1 + $0x568] sm:$0xff]  ;;  %v179_v49 = vld [vmem:[%s2864_s1 + $0x4f8] sm:$0xff] }
  0x3c   :  { %1631 = vmatprep.subr.bf16.mxu1 %v1630_v3  ;;  %v154_v3 = vld [vmem:[%s2864_s1 + $0x430] sm:$0xff]  ;;  %v1682_v6 = vpack.c.bf16 %v203_v63, %v202_v62  ;;  %v1666_v55 = vpack.c.bf16 %v179_v49, %v178_v48  ;;  %v163_v57 = vld [vmem:[%s2864_s1 + $0x478] sm:$0xff]  ;;  %v228_v60 = vld [vmem:[%s2864_s1 + $0x680] sm:$0xff] }
  0x3d   :  { %1601 = vmatpush3.bf16.msra.mxu0 %v1600_v9  ;;  %v173_v9 = vld [vmem:[%s2864_s1 + $0x4c8] sm:$0xff]  ;;  %v1652_v13 = vpack.c.bf16 %v155_v4, %v154_v3  ;;  %v210_v50 = vld [vmem:[%s2864_s1 + $0x5f0] sm:$0xff]  ;;  %v195_v59 = vld [vmem:[%s2864_s1 + $0x578] sm:$0xff] }
  0x3e   :  { %1603 = vmatprep.subr.bf16.mxu0 %v1602_v12  ;;  %v205_v12 = vld [vmem:[%s2864_s1 + $0x5c8] sm:$0xff]  ;;  %v1654_v15 = vpack.c.bf16 %v173_v9, %v172_v8  ;;  %v162_v56 = vld [vmem:[%s2864_s1 + $0x470] sm:$0xff]  ;;  %v260_v62 = vld [vmem:[%s2864_s1 + $0x780] sm:$0xff] }
  0x3f   :  { %1633 = vmatpush3.bf16.msra.mxu1 %v1632_v11  ;;  %v204_v11 = vld [vmem:[%s2864_s1 + $0x5c0] sm:$0xff]  ;;  %v229_v61 = vld [vmem:[%s2864_s1 + $0x688] sm:$0xff]  ;;  %v230_v9 = vld [vmem:[%s2864_s1 + $0x690] sm:$0xff] }
  0x40   :  { %1635 = vmatprep.subr.bf16.mxu1 %v1634_v16  ;;  %v156_v16 = vld [vmem:[%s2864_s1 + $0x440] sm:$0xff]  ;;  %v1686_v19 = vpack.c.bf16 %v205_v12, %v204_v11  ;;  %v261_v63 = vld [vmem:[%s2864_s1 + $0x788] sm:$0xff]  ;;  %v1702_v3 = vpack.c.bf16 %v229_v61, %v228_v60  ;;  %v231_v11 = vld [vmem:[%s2864_s1 + $0x698] sm:$0xff] }
  0x41   :  { %1605 = vmatpush3.bf16.msra.mxu0 %v1604_v22  ;;  %v175_v22 = vld [vmem:[%s2864_s1 + $0x4d8] sm:$0xff]  ;;  %v212_v4 = vld [vmem:[%s2864_s1 + $0x600] sm:$0xff]  ;;  %v213_v5 = vld [vmem:[%s2864_s1 + $0x608] sm:$0xff]  ;;  %v1734_v7 = vpack.c.bf16 %v261_v63, %v260_v62  ;;  %v1706_v18 = vpack.c.bf16 %v231_v11, %v230_v9 }
  0x42   :  { %1639 = vmatprep.subr.bf16.mxu0 %v1638_v25  ;;  %v1656_v25 = vpack.c.bf16 %v157_v17, %v156_v16  ;;  %v1658_v27 = vpack.c.bf16 %v175_v22, %v174_v21  ;;  %v245_v8 = vld [vmem:[%s2864_s1 + $0x708] sm:$0xff]  ;;  %v1704_v16 = vpack.c.bf16 %v213_v5, %v212_v4  ;;  %v215_v20 = vld [vmem:[%s2864_s1 + $0x618] sm:$0xff]  ;;  %v246_v21 = vld [vmem:[%s2864_s1 + $0x710] sm:$0xff] }
  0x43   :  { %1637 = vmatpush3.bf16.msra.mxu1 %v1636_v24  ;;  %v207_v24 = vld [vmem:[%s2864_s1 + $0x5d8] sm:$0xff] }
  0x44   :  { %1671 = vmatprep.subr.bf16.mxu1 %v1670_v29  ;;  %642 = vmatmul.mubr.f32.vlgmr.msra.gmra.mrb[2].mxu0 %v2186_v32  ;;  %v1676_v32 = vpack.c.bf16 %v183_v46, %v182_v42  ;;  %v159_v29 = vld [vmem:[%s2864_s1 + $0x458] sm:$0xff]  ;;  %v1690_v31 = vpack.c.bf16 %v207_v24, %v206_v23  ;;  %v160_v42 = vld [vmem:[%s2864_s1 + $0x460] sm:$0xff] }
  0x45   :  { %1641 = vmatpush3.bf16.msra.mxu0 %v1640_v35  ;;  %781 = vmatprep.mubr.f32.mxu0 %v381_v51  ;;  %v177_v35 = vld [vmem:[%s2864_s1 + $0x4e8] sm:$0xff]  ;;  %v211_v51 = vld [vmem:[%s2864_s1 + $0x5f8] sm:$0xff]  ;;  %v232_v24 = vld [vmem:[%s2864_s1 + $0x6a0] sm:$0xff] }
  0x46   :  { %712 = vmatmul.mubr.f32.vlgmr.msra.gmra.mrb[2].mxu1 %v2200_v41  ;;  %1643 = vmatprep.subr.bf16.mxu0 %v1642_v38  ;;  %v382_v41 = vcombine.high %v2349_v52, %v2349_v52  ;;  %v1660_v38 = vpack.c.bf16 %v159_v29, %v158_v28  ;;  %v1662_v40 = vpack.c.bf16 %v177_v35, %v176_v34  ;;  %v247_v23 = vld [vmem:[%s2864_s1 + $0x718] sm:$0xff]  ;;  %v265_v28 = vld [vmem:[%s2864_s1 + $0x7a8] sm:$0xff]  ;;  %v248_v35 = vld [vmem:[%s2864_s1 + $0x720] sm:$0xff] }
  0x47   :  { %1673 = vmatpush3.bf16.msra.mxu1 %v1672_v36  ;;  %v208_v36 = vld [vmem:[%s2864_s1 + $0x5e0] sm:$0xff]  ;;  %v217_v34 = vld [vmem:[%s2864_s1 + $0x628] sm:$0xff] }
  0x48   :  { %1675 = vmatprep.subr.bf16.mxu1 %v1674_v45  ;;  %851 = vmatprep.mubr.f32.mxu1 %v382_v41  ;;  %v192_v45 = vld [vmem:[%s2864_s1 + $0x560] sm:$0xff]  ;;  %v1694_v46 = vpack.c.bf16 %v209_v37, %v208_v36  ;;  %v194_v41 = vld [vmem:[%s2864_s1 + $0x570] sm:$0xff] }
  0x49   :  { %1645 = vmatpush3.bf16.msra.mxu0 %v1644_v53  ;;  %v1664_v53 = vpack.c.bf16 %v161_v44, %v160_v42 }
  0x4a   :  { %1647 = vmatprep.subr.bf16.mxu0 %v1646_v54  ;;  %v1696_v54 = vpack.c.bf16 %v193_v47, %v192_v45 }
  0x4b   :  { %1677 = vmatpush3.bf16.msra.mxu1 %v1676_v32  ;;  %v18_v32 = vld [vmem:[%s2863_s0 + $0x18] sm:$0xff] }
  0x4c   :  { %1679 = vmatprep.subr.bf16.mxu1 %v1678_v58  ;;  %v1698_v58 = vpack.c.bf16 %v211_v51, %v210_v50  ;;  %v2520_v12 = vrot.slane %v18_v32, %v2019_v10 }
  0x4d   :  { %1649 = vmatpush3.bf16.msra.mxu0 %v1648_v0  ;;  %v383_v0 = vcombine.high %v18_v32, %v18_v32 }
  0x4e   :  { %1651 = vmatprep.subr.bf16.mxu0 %v1650_v2  ;;  %v1700_v2 = vpack.c.bf16 %v195_v59, %v194_v41 }
  0x4f   :  { %1681 = vmatpush3.bf16.msra.mxu1 %v1680_v1  ;;  %v1668_v1 = vpack.c.bf16 %v163_v57, %v162_v56 }
  0x50   :  { %1683 = vmatprep.subr.bf16.mxu1 %v1682_v6  ;;  %v244_v6 = vld [vmem:[%s2864_s1 + $0x700] sm:$0xff] }
  0x51   :  { %1653 = vmatpush3.bf16.msra.mxu0 %v1652_v13  ;;  %v262_v13 = vld [vmem:[%s2864_s1 + $0x790] sm:$0xff]  ;;  %v1736_v17 = vpack.c.bf16 %v245_v8, %v244_v6 }
  0x52   :  { %1655 = vmatprep.subr.bf16.mxu0 %v1654_v15  ;;  %v2529_v15 = vrot.slane %v383_v0, %v2019_v10 }
  0x53   :  { %1685 = vmatpush3.bf16.msra.mxu1 %v1684_v14  ;;  %v263_v14 = vld [vmem:[%s2864_s1 + $0x798] sm:$0xff] }
  0x54   :  { %1687 = vmatprep.subr.bf16.mxu1 %v1686_v19  ;;  %v214_v19 = vld [vmem:[%s2864_s1 + $0x610] sm:$0xff]  ;;  %v1738_v22 = vpack.c.bf16 %v263_v14, %v262_v13  ;;  %v399_v29 = vcombine.high %v2529_v15, %v2529_v15 }
  0x55   :  { %1657 = vmatpush3.bf16.msra.mxu0 %v1656_v25  ;;  %v233_v25 = vld [vmem:[%s2864_s1 + $0x6a8] sm:$0xff]  ;;  %v1708_v30 = vpack.c.bf16 %v215_v20, %v214_v19 }
  0x56   :  { %1659 = vmatprep.subr.bf16.mxu0 %v1658_v27  ;;  %v264_v27 = vld [vmem:[%s2864_s1 + $0x7a0] sm:$0xff]  ;;  %v1710_v33 = vpack.c.bf16 %v233_v25, %v232_v24 }
  0x57   :  { %1689 = vmatpush3.bf16.msra.mxu1 %v1688_v26  ;;  %v398_v26 = vcombine.high %v2520_v12, %v2520_v12 }
  0x58   :  { %1691 = vmatprep.subr.bf16.mxu1 %v1690_v31  ;;  %v216_v31 = vld [vmem:[%s2864_s1 + $0x620] sm:$0xff] }
  0x59   :  { %1661 = vmatpush3.bf16.msra.mxu0 %v1660_v38 }
  0x5a   :  { %1663 = vmatprep.subr.bf16.mxu0 %v1662_v40 }
  0x5b   :  { %1693 = vmatpush3.bf16.msra.mxu1 %v1692_v39 }
  0x5c   :  { %1695 = vmatprep.subr.bf16.mxu1 %v1694_v46 }
  0x5d   :  { %1665 = vmatpush3.bf16.msra.mxu0 %v1664_v53 }
  0x5e   :  { %1667 = vmatprep.subr.bf16.mxu0 %v1666_v55 }
  0x5f   :  { %1697 = vmatpush3.bf16.msra.mxu1 %v1696_v54 }
  0x60   :  { %1699 = vmatprep.subr.bf16.mxu1 %v1698_v58 }
  0x61   :  { %1669 = vmatpush3.bf16.msra.mxu0 %v1668_v1 }
  0x62   :  { %1703 = vmatprep.subr.bf16.mxu0 %v1702_v3 }
  0x63   :  { %1701 = vmatpush3.bf16.msra.mxu1 %v1700_v2 }
  0x64   :  { %1735 = vmatprep.subr.bf16.mxu1 %v1734_v7  ;;  %782 = vmatmul.mubr.f32.vlgmr.msra.gmra.mrb[4].mxu0 %v2328_v43  ;;  %v1740_v43 = vpack.c.bf16 %v247_v23, %v246_v21 }
  0x65   :  { %1705 = vmatpush3.bf16.msra.mxu0 %v1704_v16 }
  0x66   :  { %852 = vmatmul.mubr.f32.vlgmr.msra.gmra.mrb[4].mxu1 %v2349_v52  ;;  %1707 = vmatprep.subr.bf16.mxu0 %v1706_v18 }
  0x67   :  { %1737 = vmatpush3.bf16.msra.mxu1 %v1736_v17 }
  0x68   :  { %8 = vsyncpa [#allocation3], 0  ;;  %1739 = vmatprep.subr.bf16.mxu1 %v1738_v22  ;;  %v1742_v52 = vpack.c.bf16 %v265_v28, %v264_v27  ;;  %v249_v36 = vld [vmem:[%s2864_s1 + $0x728] sm:$0xff]  ;;  %v234_v37 = vld [vmem:[%s2864_s1 + $0x6b0] sm:$0xff]  ;;  %921 = vmatprep.mubr.f32.mxu0 %v398_v26  ;;  %v1712_v42 = vpack.c.bf16 %v217_v34, %v216_v31  ;;  %vm1852_vm0 = vmmov 0   ;;  %vm434_vm1 = vcmask 785408  }
  0x69   :  { %v235_v38 = vld [vmem:[%s2864_s1 + $0x6b8] sm:$0xff]  ;;  %v266_v39 = vld [vmem:[%s2864_s1 + $0x7b0] sm:$0xff]  ;;  %991 = vmatprep.mubr.f32.mxu1 %v399_v29  ;;  %1709 = vmatpush3.bf16.msra.mxu0 %v1708_v30  ;;  %v1744_v44 = vpack.c.bf16 %v249_v36, %v248_v35  ;;  %v236_v51 = vld [vmem:[%s2864_s1 + $0x6c0] sm:$0xff]  ;;  %vm1137_vm2 = vcmask 312320  }
  0x6a   :  { %v267_v40 = vld [vmem:[%s2864_s1 + $0x7b8] sm:$0xff]  ;;  %1711 = vmatprep.subr.bf16.mxu0 %v1710_v33  ;;  %v1714_v45 = vpack.c.bf16 %v235_v38, %v234_v37  ;;  %v218_v46 = vld [vmem:[%s2864_s1 + $0x630] sm:$0xff]  ;;  %v237_v53 = vld [vmem:[%s2864_s1 + $0x6c8] sm:$0xff] }
  0x6b   :  { %1741 = vmatpush3.bf16.msra.mxu1 %v1740_v43  ;;  %v219_v47 = vld [vmem:[%s2864_s1 + $0x638] sm:$0xff]  ;;  %v250_v48 = vld [vmem:[%s2864_s1 + $0x730] sm:$0xff]  ;;  %v1746_v49 = vpack.c.bf16 %v267_v40, %v266_v39  ;;  %v268_v32 = vld [vmem:[%s2864_s1 + $0x7c0] sm:$0xff]  ;;  %v1718_v57 = vpack.c.bf16 %v237_v53, %v236_v51 }
  0x6c   :  { %1743 = vmatprep.subr.bf16.mxu1 %v1742_v52  ;;  %v251_v50 = vld [vmem:[%s2864_s1 + $0x738] sm:$0xff]  ;;  %v269_v54 = vld [vmem:[%s2864_s1 + $0x7c8] sm:$0xff]  ;;  %v1716_v55 = vpack.c.bf16 %v219_v47, %v218_v46  ;;  %v220_v41 = vld [vmem:[%s2864_s1 + $0x640] sm:$0xff] }
  0x6d   :  { %1713 = vmatpush3.bf16.msra.mxu0 %v1712_v42  ;;  %v1748_v56 = vpack.c.bf16 %v251_v50, %v250_v48  ;;  %v221_v58 = vld [vmem:[%s2864_s1 + $0x648] sm:$0xff]  ;;  %v252_v59 = vld [vmem:[%s2864_s1 + $0x740] sm:$0xff]  ;;  %v1750_v60 = vpack.c.bf16 %v269_v54, %v268_v32  ;;  %v238_v62 = vld [vmem:[%s2864_s1 + $0x6d0] sm:$0xff] }
  0x6e   :  { %1715 = vmatprep.subr.bf16.mxu0 %v1714_v45  ;;  %v253_v61 = vld [vmem:[%s2864_s1 + $0x748] sm:$0xff]  ;;  %v239_v63 = vld [vmem:[%s2864_s1 + $0x6d8] sm:$0xff]  ;;  %v270_v0 = vld [vmem:[%s2864_s1 + $0x7d0] sm:$0xff]  ;;  %v1720_v2 = vpack.c.bf16 %v221_v58, %v220_v41  ;;  %v1851_v41 = vmov 0.0|0.0  }
  0x6f   :  { %1745 = vmatpush3.bf16.msra.mxu1 %v1744_v44  ;;  %v271_v1 = vld [vmem:[%s2864_s1 + $0x7d8] sm:$0xff]  ;;  %v1752_v3 = vpack.c.bf16 %v253_v61, %v252_v59  ;;  %v1722_v4 = vpack.c.bf16 %v239_v63, %v238_v62  ;;  %v222_v5 = vld [vmem:[%s2864_s1 + $0x650] sm:$0xff]  ;;  %v240_v11 = vld [vmem:[%s2864_s1 + $0x6e0] sm:$0xff] }
  0x70   :  { %1747 = vmatprep.subr.bf16.mxu1 %v1746_v49  ;;  %v223_v6 = vld [vmem:[%s2864_s1 + $0x658] sm:$0xff]  ;;  %v254_v7 = vld [vmem:[%s2864_s1 + $0x750] sm:$0xff]  ;;  %v1754_v8 = vpack.c.bf16 %v271_v1, %v270_v0  ;;  %v241_v13 = vld [vmem:[%s2864_s1 + $0x6e8] sm:$0xff] }
  0x71   :  { %1717 = vmatpush3.bf16.msra.mxu0 %v1716_v55  ;;  %v255_v9 = vld [vmem:[%s2864_s1 + $0x758] sm:$0xff]  ;;  %v272_v14 = vld [vmem:[%s2864_s1 + $0x7e0] sm:$0xff]  ;;  %v273_v16 = vld [vmem:[%s2864_s1 + $0x7e8] sm:$0xff]  ;;  %v1724_v17 = vpack.c.bf16 %v223_v6, %v222_v5  ;;  %v1726_v19 = vpack.c.bf16 %v241_v13, %v240_v11 }
  0x72   :  { %1719 = vmatprep.subr.bf16.mxu0 %v1718_v57  ;;  %v1756_v18 = vpack.c.bf16 %v255_v9, %v254_v7  ;;  %v224_v20 = vld [vmem:[%s2864_s1 + $0x660] sm:$0xff]  ;;  %v225_v21 = vld [vmem:[%s2864_s1 + $0x668] sm:$0xff]  ;;  %v1758_v23 = vpack.c.bf16 %v273_v16, %v272_v14  ;;  %v242_v25 = vld [vmem:[%s2864_s1 + $0x6f0] sm:$0xff] }
  0x73   :  { %1749 = vmatpush3.bf16.msra.mxu1 %v1748_v56  ;;  %v256_v22 = vld [vmem:[%s2864_s1 + $0x760] sm:$0xff]  ;;  %v257_v24 = vld [vmem:[%s2864_s1 + $0x768] sm:$0xff]  ;;  %v243_v26 = vld [vmem:[%s2864_s1 + $0x6f8] sm:$0xff]  ;;  %v1728_v29 = vpack.c.bf16 %v225_v21, %v224_v20 }
  0x74   :  { %1751 = vmatprep.subr.bf16.mxu1 %v1750_v60  ;;  %v274_v27 = vld [vmem:[%s2864_s1 + $0x7f0] sm:$0xff]  ;;  %v275_v28 = vld [vmem:[%s2864_s1 + $0x7f8] sm:$0xff]  ;;  %v1760_v30 = vpack.c.bf16 %v257_v24, %v256_v22  ;;  %v1730_v31 = vpack.c.bf16 %v243_v26, %v242_v25  ;;  %v292_v36 = vld [vmem:[%s2864_s1 + $0x880] sm:$0xff] }
  0x75   :  { %1721 = vmatpush3.bf16.msra.mxu0 %v1720_v2  ;;  %v226_v43 = vld [vmem:[%s2864_s1 + $0x670] sm:$0xff]  ;;  %v227_v33 = vld [vmem:[%s2864_s1 + $0x678] sm:$0xff]  ;;  %v1762_v35 = vpack.c.bf16 %v275_v28, %v274_v27  ;;  %v293_v37 = vld [vmem:[%s2864_s1 + $0x888] sm:$0xff] }
  0x76   :  { %1723 = vmatprep.subr.bf16.mxu0 %v1722_v4  ;;  %v258_v34 = vld [vmem:[%s2864_s1 + $0x770] sm:$0xff]  ;;  %v259_v52 = vld [vmem:[%s2864_s1 + $0x778] sm:$0xff]  ;;  %v2702_v38 = vld [vmem:[%s2863_s0 + $0x20] sm:$0x3f]  ;;  %v1732_v39 = vpack.c.bf16 %v227_v33, %v226_v43  ;;  %v1766_v42 = vpack.c.bf16 %v293_v37, %v292_v36  ;;  %v1853_v4 = vmov 0.0  }
  0x77   :  { %1753 = vmatpush3.bf16.msra.mxu1 %v1752_v3  ;;  %v1764_v40 = vpack.c.bf16 %v259_v52, %v258_v34  ;;  %v276_v44 = vld [vmem:[%s2864_s1 + $0x800] sm:$0xff]  ;;  %v277_v45 = vld [vmem:[%s2864_s1 + $0x808] sm:$0xff]  ;;  %v294_v46 = vld [vmem:[%s2864_s1 + $0x890] sm:$0xff]  ;;  %v2724_v50 = vrot.slane %v2702_v38, %v2019_v10  ;;  %v400_v52 = vcombine.high %v2702_v38, %v2702_v38 }
  0x78   :  { %1755 = vmatprep.subr.bf16.mxu1 %v1754_v8  ;;  %v295_v47 = vld [vmem:[%s2864_s1 + $0x898] sm:$0xff]  ;;  %v308_v48 = vld [vmem:[%s2864_s1 + $0x900] sm:$0xff]  ;;  %v309_v49 = vld [vmem:[%s2864_s1 + $0x908] sm:$0xff]  ;;  %v1768_v51 = vpack.c.bf16 %v277_v45, %v276_v44 }
  0x79   :  { %1725 = vmatpush3.bf16.msra.mxu0 %v1724_v17  ;;  %v1770_v53 = vpack.c.bf16 %v295_v47, %v294_v46  ;;  %v278_v32 = vld [vmem:[%s2864_s1 + $0x810] sm:$0xff]  ;;  %v279_v54 = vld [vmem:[%s2864_s1 + $0x818] sm:$0xff]  ;;  %v296_v55 = vld [vmem:[%s2864_s1 + $0x8a0] sm:$0xff]  ;;  %v1799_v56 = vpack.c.bf16 %v309_v49, %v308_v48  ;;  %v415_v60 = vcombine.high %v2724_v50, %v2724_v50  ;;  %v414_v45 = vrot.slane %v400_v52, %v2019_v10 }
  0x7a   :  { %1727 = vmatprep.subr.bf16.mxu0 %v1726_v19  ;;  %v297_v57 = vld [vmem:[%s2864_s1 + $0x8a8] sm:$0xff]  ;;  %v310_v58 = vld [vmem:[%s2864_s1 + $0x910] sm:$0xff]  ;;  %v311_v59 = vld [vmem:[%s2864_s1 + $0x918] sm:$0xff]  ;;  %v1772_v61 = vpack.c.bf16 %v279_v54, %v278_v32 }
  0x7b   :  { %1757 = vmatpush3.bf16.msra.mxu1 %v1756_v18  ;;  %v1774_v62 = vpack.c.bf16 %v297_v57, %v296_v55  ;;  %v280_v63 = vld [vmem:[%s2864_s1 + $0x820] sm:$0xff]  ;;  %v281_v0 = vld [vmem:[%s2864_s1 + $0x828] sm:$0xff]  ;;  %v298_v1 = vld [vmem:[%s2864_s1 + $0x8b0] sm:$0xff] }
  0x7c   :  { %1759 = vmatprep.subr.bf16.mxu1 %v1758_v23  ;;  %v312_v2 = vld [vmem:[%s2864_s1 + $0x920] sm:$0xff]  ;;  %v313_v3 = vld [vmem:[%s2864_s1 + $0x928] sm:$0xff]  ;;  %v1776_v5 = vpack.c.bf16 %v281_v0, %v280_v63  ;;  %v282_v7 = vld [vmem:[%s2864_s1 + $0x830] sm:$0xff] }
  0x7d   :  { %1729 = vmatpush3.bf16.msra.mxu0 %v1728_v29  ;;  %v283_v8 = vld [vmem:[%s2864_s1 + $0x838] sm:$0xff]  ;;  %v300_v9 = vld [vmem:[%s2864_s1 + $0x8c0] sm:$0xff]  ;;  %v1805_v11 = vpack.c.bf16 %v313_v3, %v312_v2  ;;  %v301_v13 = vld [vmem:[%s2864_s1 + $0x8c8] sm:$0xff] }
  0x7e   :  { %1731 = vmatprep.subr.bf16.mxu0 %v1730_v31  ;;  %v314_v14 = vld [vmem:[%s2864_s1 + $0x930] sm:$0xff]  ;;  %v315_v16 = vld [vmem:[%s2864_s1 + $0x938] sm:$0xff]  ;;  %v1780_v17 = vpack.c.bf16 %v283_v8, %v282_v7  ;;  %v1782_v18 = vpack.c.bf16 %v301_v13, %v300_v9  ;;  %v284_v19 = vld [vmem:[%s2864_s1 + $0x840] sm:$0xff] }
  0x7f   :  { %1761 = vmatpush3.bf16.msra.mxu1 %v1760_v30  ;;  %v285_v20 = vld [vmem:[%s2864_s1 + $0x848] sm:$0xff]  ;;  %v302_v21 = vld [vmem:[%s2864_s1 + $0x8d0] sm:$0xff]  ;;  %v1808_v22 = vpack.c.bf16 %v315_v16, %v314_v14  ;;  %v303_v23 = vld [vmem:[%s2864_s1 + $0x8d8] sm:$0xff] }
  0x80   :  { %1763 = vmatprep.subr.bf16.mxu1 %v1762_v35  ;;  %v316_v24 = vld [vmem:[%s2864_s1 + $0x940] sm:$0xff]  ;;  %v317_v25 = vld [vmem:[%s2864_s1 + $0x948] sm:$0xff]  ;;  %v1784_v26 = vpack.c.bf16 %v285_v20, %v284_v19  ;;  %v1786_v27 = vpack.c.bf16 %v303_v23, %v302_v21  ;;  %v286_v28 = vld [vmem:[%s2864_s1 + $0x850] sm:$0xff] }
  0x81   :  { %1733 = vmatpush3.bf16.msra.mxu0 %v1732_v39  ;;  %v287_v29 = vld [vmem:[%s2864_s1 + $0x858] sm:$0xff]  ;;  %v304_v30 = vld [vmem:[%s2864_s1 + $0x8e0] sm:$0xff]  ;;  %v1811_v31 = vpack.c.bf16 %v317_v25, %v316_v24  ;;  %v305_v43 = vld [vmem:[%s2864_s1 + $0x8e8] sm:$0xff] }
  0x82   :  { %1767 = vmatprep.subr.bf16.mxu0 %v1766_v42  ;;  %v318_v33 = vld [vmem:[%s2864_s1 + $0x950] sm:$0xff]  ;;  %v319_v34 = vld [vmem:[%s2864_s1 + $0x958] sm:$0xff]  ;;  %v1788_v35 = vpack.c.bf16 %v287_v29, %v286_v28  ;;  %v1790_v36 = vpack.c.bf16 %v305_v43, %v304_v30  ;;  %v288_v37 = vld [vmem:[%s2864_s1 + $0x860] sm:$0xff] }
  0x83   :  { %1765 = vmatpush3.bf16.msra.mxu1 %v1764_v40  ;;  %v289_v39 = vld [vmem:[%s2864_s1 + $0x868] sm:$0xff]  ;;  %v1814_v40 = vpack.c.bf16 %v319_v34, %v318_v33  ;;  %v306_v42 = vld [vmem:[%s2864_s1 + $0x8f0] sm:$0xff]  ;;  %v307_v38 = vld [vmem:[%s2864_s1 + $0x8f8] sm:$0xff] }
  0x84   :  { %1798 = vmatprep.subr.bf16.mxu1 %v1851_v41  ;;  %922 = vmatmul.mubr.f32.vlgmr.msra.gmra.mrb[6].mxu0 %v2520_v12  ;;  %v1802_v12 = vpack.c.bf16 %v311_v59, %v310_v58  ;;  %v1792_v44 = vpack.c.bf16 %v289_v39, %v288_v37  ;;  %v1794_v46 = vpack.c.bf16 %v307_v38, %v306_v42  ;;  %v290_v47 = vld [vmem:[%s2864_s1 + $0x870] sm:$0xff]  ;;  %v291_v48 = vld [vmem:[%s2864_s1 + $0x878] sm:$0xff] }
  0x85   :  { %1769 = vmatpush3.bf16.msra.mxu0 %v1768_v51  ;;  %1061 = vmatprep.mubr.f32.mxu0 %v415_v60  ;;  %v1796_v49 = vpack.c.bf16 %v291_v48, %v290_v47  ;;  %v1153_v51 = vld [vmem:[%s2865_s2] ss:$0 sm:$0xff] }
  0x86   :  { %992 = vmatmul.mubr.f32.vlgmr.msra.gmra.mrb[6].mxu1 %v2529_v15  ;;  %1771 = vmatprep.subr.bf16.mxu0 %v1770_v53  ;;  %v299_v15 = vld [vmem:[%s2864_s1 + $0x8b8] sm:$0xff]  ;;  %s1854_s1 = smov [#allocation2]  }
  0x87   :  { %1800 = vmatpush3.bf16.msra.mxu1 %v1799_v56  ;;  %1507 = vmatprep.mubr.msk.f32.mxu1 %vm1852_vm0, %v1853_v4  ;;  %v1778_v6 = vpack.c.bf16 %v299_v15, %v298_v1  ;;  %s1145_s2 = sshll.u32 %s1854_s1, 4  ;;  %s1146_s2 = int_to_ptr.vmem [resolvable:$true] %s1145_s2 }
  0x88   :  { %1801 = vmatprep.subr.bf16.mxu1 %v1851_v41  ;;  %s1826_s27 = scalar_lea.vmem %s1146_s2, 32  ;;  %p1831_p1 = scmp.lt.s32.totalorder %s1146_s2, %s1146_s2 }
  0x89   :  { %1773 = vmatpush3.bf16.msra.mxu0 %v1772_v61  ;;  %p1827_p0 = scmp.ne.s32.totalorder %s1146_s2, %s1826_s27  ;;  %p1832_p2 = scmp.lt.s32.totalorder %s1826_s27, %s1826_s27 }
  0x8a   :  { %1775 = vmatprep.subr.bf16.mxu0 %v1774_v62 }
  0x8b   :  { %1803 = vmatpush3.bf16.msra.mxu1 %v1802_v12  ;;  %p1833_p3 = por %p1832_p2, %p1831_p1 }
  0x8c   :  { %1804 = vmatprep.subr.bf16.mxu1 %v1851_v41 }
  0x8d   :  { %1777 = vmatpush3.bf16.msra.mxu0 %v1776_v5  ;;  %p1834_p4 = pnand %p1833_p3, %p1827_p0 }
  0x8e   :  { %1779 = vmatprep.subr.bf16.mxu0 %v1778_v6 }
  0x8f   :  { %1806 = vmatpush3.bf16.msra.mxu1 %v1805_v11 }
  0x90   :  { %1807 = vmatprep.subr.bf16.mxu1 %v1851_v41 }
  0x91   :  { %1781 = vmatpush3.bf16.msra.mxu0 %v1780_v17 }
  0x92   :  { %1783 = vmatprep.subr.bf16.mxu0 %v1782_v18 }
  0x93   :  { %1809 = vmatpush3.bf16.msra.mxu1 %v1808_v22 }
  0x94   :  { %1810 = vmatprep.subr.bf16.mxu1 %v1851_v41 }
  0x95   :  { %1785 = vmatpush3.bf16.msra.mxu0 %v1784_v26 }
  0x96   :  { %1787 = vmatprep.subr.bf16.mxu0 %v1786_v27 }
  0x97   :  { %1812 = vmatpush3.bf16.msra.mxu1 %v1811_v31 }
  0x98   :  { %1813 = vmatprep.subr.bf16.mxu1 %v1851_v41 }
  0x99   :  { %1789 = vmatpush3.bf16.msra.mxu0 %v1788_v35 }
  0x9a   :  { %1791 = vmatprep.subr.bf16.mxu0 %v1790_v36 }
  0x9b   :  { %1815 = vmatpush3.bf16.msra.mxu1 %v1814_v40 }
  0x9d   :  { %1793 = vmatpush3.bf16.msra.mxu0 %v1792_v44 }
  0x9e   :  { %1508 = vmatmul.mubr.msk.f32.vlgmr.msra.gmra.mrb[8].mxu1 %vm434_vm1, %v414_v45  ;;  %1795 = vmatprep.subr.bf16.mxu0 %v1794_v46 }
  0xa1   :  { %1797 = vmatpush3.bf16.msra.mxu0 %v1796_v49 }
  0xa4   :  { %1062 = vmatmul.mubr.f32.vlgmr.msra.gmra.mrb[8].mxu0 %v2724_v50 }
  0xf7   :  { %v1187_v10 = vpop.f32.mrb[0].mxu0 }
  0xf8   :  { %v1188_v53 = vpop.f32.mrb[1].mxu0 }
  0xf9   :  { %v1222_v32 = vpop.f32.mrb[0].mxu1  ;;  %v1189_v54 = vadd.f32 %v1188_v53, %v1187_v10 }
  0xfa   :  { %v1223_v55 = vpop.f32.mrb[1].mxu1 }
  0xfb   :  { %v1224_v56 = vadd.f32 %v1223_v55, %v1222_v32  ;;  %v504_v57 = vadd.f32 %v1189_v54, %v1153_v51 }
  0xfd   :  { %v574_v41 = vadd.f32 %v1224_v56, %v504_v57 }
 0x117   :  { %v1257_v58 = vpop.f32.mrb[2].mxu0 }
 0x118   :  { %v1258_v59 = vpop.f32.mrb[3].mxu0 }
 0x119   :  { %v1292_v60 = vpop.f32.mrb[2].mxu1  ;;  %v1259_v61 = vadd.f32 %v1258_v59, %v1257_v58 }
 0x11a   :  { %v1293_v62 = vpop.f32.mrb[3].mxu1 }
 0x11b   :  { %v1294_v63 = vadd.f32 %v1293_v62, %v1292_v60  ;;  %v644_v0 = vadd.f32 %v1259_v61, %v574_v41 }
 0x11d   :  { %v714_v50 = vadd.f32 %v1294_v63, %v644_v0 }
 0x137   :  { %v1327_v1 = vpop.f32.mrb[4].mxu0 }
 0x138   :  { %v1328_v12 = vpop.f32.mrb[5].mxu0 }
 0x139   :  { %v1362_v15 = vpop.f32.mrb[4].mxu1  ;;  %v1329_v2 = vadd.f32 %v1328_v12, %v1327_v1 }
 0x13a   :  { %v1363_v3 = vpop.f32.mrb[5].mxu1 }
 0x13b   :  { %v1364_v4 = vadd.f32 %v1363_v3, %v1362_v15  ;;  %v784_v5 = vadd.f32 %v1329_v2, %v714_v50 }
 0x13d   :  { %v854_v6 = vadd.f32 %v1364_v4, %v784_v5 }
 0x157   :  { %v1397_v7 = vpop.f32.mrb[6].mxu0 }
 0x158   :  { %v1398_v8 = vpop.f32.mrb[7].mxu0 }
 0x159   :  { %v1432_v9 = vpop.f32.mrb[6].mxu1  ;;  %v1399_v11 = vadd.f32 %v1398_v8, %v1397_v7 }
 0x15a   :  { %v1433_v13 = vpop.f32.mrb[7].mxu1 }
 0x15b   :  { %v1434_v14 = vadd.f32 %v1433_v13, %v1432_v9  ;;  %v924_v16 = vadd.f32 %v1399_v11, %v854_v6 }
 0x15d   :  { %v994_v17 = vadd.f32 %v1434_v14, %v924_v16 }
 0x171   :  { %v1133_v18 = vpop.f32.mrb[8].mxu1 }
 0x172   :  { %v1509_v19 = vpop.f32.mrb[9].mxu1 }
 0x177   :  { %v1467_v20 = vpop.f32.mrb[8].mxu0 }
 0x178   :  { %v1468_v21 = vpop.f32.mrb[9].mxu0 }
 0x179   :  { %v1469_v22 = vadd.f32 %v1468_v21, %v1467_v20 }
 0x17b   :  { %v1064_v23 = vadd.f32 %v1469_v22, %v994_v17 }
 0x17d   :  { %v1134_v24 = vadd.f32 %v1133_v18, %v1064_v23 }
 0x17f   :  { %1138 = vst.msk [vmem:[#allocation2] sm:$0x3] %vm1137_vm2, %v1134_v24 }
 0x180   :  { %1837 = shalt.err (!%p1834_p4)
}
 0x181   :  { %s1838_s30 = scalar_lea.hbm %s2866_s3, 32 }
 0x182   :  { %p1839_p5 = scmp.ne.s32.totalorder %s2866_s3, %s1838_s30  ;;  %p1842_p6 = scmp.lt.u32.totalorder %s1838_s30, %s2866_s3 }
 0x184   :  { %p1844_p7 = pnand %p1842_p6, %p1839_p5 }
 0x186   :  { %1847 = shalt.err (!%p1844_p7)
}
 0x187   :  { %1148 = dma.vmem_to_hbm [thread:$0]  %s1146_s2, 32, %s2866_s3, [#allocation3]  }
 0x188   :  { %1848 = dma.done.wait [#allocation3], 32  }
 0x189   :  { %1849 = vsyncadd [#allocation3], 4294967264 }
 0x18a   :  { %1152 = vsyncpa [#allocation3], 1 }

</bundles_post_ra>
